<compile_context>
chip_gen: v5e
topology: v5e:2x2
jax: 0.10.0
libtpu: 0.0.40
codegen_flags: <defaults>
</compile_context>

<pallas_src>
import functools

import jax
import jax.numpy as jnp
from jax.experimental import pallas as pl
from jax.experimental.pallas import tpu as pltpu


def _decom_loss_kernel(x_ref, y_ref, rl_ref, rh_ref, il_ref, ih_ref,
                       out_ref, ci_ref, cr_ref, *, n_batch):
    bt = x_ref.shape[0]
    h = x_ref.shape[2]
    w = x_ref.shape[3]
    f32 = jnp.float32

    x = x_ref[...]            # (BT, 3, H, W)
    y = y_ref[...]
    r_low = rl_ref[...]
    r_high = rh_ref[...]
    i_low = il_ref[:, 0]      # (BT, H, W)
    i_high = ih_ref[:, 0]

    # -------- fused L1 terms: one weighted elementwise map + one sum --------
    il_b = i_low[:, None]     # (BT, 1, H, W) broadcasts against (BT, 3, H, W)
    ih_b = i_high[:, None]
    d = (jnp.abs(r_low * il_b - x)
         + jnp.abs(r_high * ih_b - y)
         + 0.001 * jnp.abs(r_high * il_b - x)
         + 0.001 * jnp.abs(r_low * ih_b - y)
         + 0.01 * jnp.abs(r_low - r_high))
    l1_sum = jnp.sum(d)

    # -------- batched smoothness (low & high stacked along leading axis) ----
    rg_low = 0.299 * r_low[:, 0] + 0.587 * r_low[:, 1] + 0.114 * r_low[:, 2]
    rg_high = 0.299 * r_high[:, 0] + 0.587 * r_high[:, 1] + 0.114 * r_high[:, 2]

    # ci canvas == 1-padded illumination, (2*BT, H+2, W+2).
    # cr canvas == 2-padded gray reflectance, (2*BT, H+4, W+4): its plain
    # 2x2 gradient over the full window equals the 1-zero-padded gradient map
    # that the padded 3x3 average pool consumes, so no extra pad op is needed.
    # Interiors are overwritten every step; only the zero borders are stored.
    ci_ref[0:bt, 1:1 + h, 1:1 + w] = i_low
    ci_ref[bt:2 * bt, 1:1 + h, 1:1 + w] = i_high
    ci_ref[:, 0:1, :] = jnp.zeros((2 * bt, 1, w + 2), f32)
    ci_ref[:, h + 1:h + 2, :] = jnp.zeros((2 * bt, 1, w + 2), f32)
    ci_ref[:, :, 0:1] = jnp.zeros((2 * bt, h + 2, 1), f32)
    ci_ref[:, :, w + 1:w + 2] = jnp.zeros((2 * bt, h + 2, 1), f32)

    cr_ref[0:bt, 2:2 + h, 2:2 + w] = rg_low
    cr_ref[bt:2 * bt, 2:2 + h, 2:2 + w] = rg_high
    cr_ref[:, 0:2, :] = jnp.zeros((2 * bt, 2, w + 4), f32)
    cr_ref[:, h + 2:h + 4, :] = jnp.zeros((2 * bt, 2, w + 4), f32)
    cr_ref[:, :, 0:2] = jnp.zeros((2 * bt, h + 4, 2), f32)
    cr_ref[:, :, w + 2:w + 4] = jnp.zeros((2 * bt, h + 4, 2), f32)

    # Gradients from offset slices of the refs (offset VMEM loads; the full
    # canvases are never materialized in vregs).
    ci_c = ci_ref[:, 1:h + 2, 1:w + 2]                 # (2*BT, H+1, W+1)
    gxi = jnp.abs(ci_c - ci_ref[:, 1:h + 2, 0:w + 1])
    gyi = jnp.abs(ci_c - ci_ref[:, 0:h + 1, 1:w + 2])

    cr_c = cr_ref[:, 1:h + 4, 1:w + 4]                 # (2*BT, H+3, W+3)
    gxr = jnp.abs(cr_c - cr_ref[:, 1:h + 4, 0:w + 3])
    gyr = jnp.abs(cr_c - cr_ref[:, 0:h + 3, 1:w + 4])

    # Separable 3x3 average pool, count_include_pad=True (always /9).
    def pool3(g):
        rows = g[:, 0:h + 1, :] + g[:, 1:h + 2, :] + g[:, 2:h + 3, :]
        return (rows[:, :, 0:w + 1] + rows[:, :, 1:w + 2]
                + rows[:, :, 2:w + 3]) * (1.0 / 9.0)

    sm = (gxi * jnp.exp(-10.0 * pool3(gxr))
          + gyi * jnp.exp(-10.0 * pool3(gyr)))         # (2*BT, H+1, W+1)
    smooth_sum = jnp.sum(sm)

    # Fold the means' denominators and the 0.1 smoothness weight into the
    # per-block partial (the L1 terms share the N*3*H*W count; the two
    # smoothness branches share the N*(H+1)*(W+1) count).
    partial = (l1_sum * (1.0 / (n_batch * 3 * h * w))
               + smooth_sum * (0.1 / (n_batch * (h + 1) * (w + 1))))
    out_ref[...] = jnp.zeros_like(out_ref) + partial


def _pick_batch_tile(n, h, w):
    # ~14 f32 values move per image pixel per batch element (x, y, r_low,
    # r_high at 3 channels + i_low, i_high at 1 channel). Aim for >= ~1 MiB of
    # HBM traffic per grid step so per-step/DMA overhead is amortized.
    per_elem_bytes = 14 * h * w * 4
    target = max(1, (1 << 20) // max(per_elem_bytes, 1))
    bt = 1
    for d in range(1, n + 1):
        if n % d == 0 and d <= target:
            bt = d
    return bt


def decom_loss(x, y, r_low, r_high, i_low, i_high):
    """Pallas TPU implementation of DecomLoss.forward. Returns a scalar."""
    n, c, h, w = x.shape
    assert c == 3 and i_low.shape[1] == 1 and i_high.shape[1] == 1

    f32 = jnp.float32
    x, y = x.astype(f32), y.astype(f32)
    r_low, r_high = r_low.astype(f32), r_high.astype(f32)
    i_low, i_high = i_low.astype(f32), i_high.astype(f32)

    bt = _pick_batch_tile(n, h, w)
    n_blocks = n // bt

    img_spec = pl.BlockSpec((bt, 3, h, w), lambda b: (b, 0, 0, 0))
    ill_spec = pl.BlockSpec((bt, 1, h, w), lambda b: (b, 0, 0, 0))
    out_spec = pl.BlockSpec((1, 1, 1), lambda b: (b, 0, 0))

    # TODO(synk): for large images (>= ~384^2) add an H-tiling grid axis with a
    # 2-row halo through the canvases so per-step blocks stay within v7x's
    # 64 MiB VMEM; optionally run the smoothness chain in bf16 on v6e/v7x and
    # pack small-W patches lane-dense along W.
    partials = pl.pallas_call(
        functools.partial(_decom_loss_kernel, n_batch=n),
        grid=(n_blocks,),
        in_specs=[img_spec, img_spec, img_spec, img_spec, ill_spec, ill_spec],
        out_specs=out_spec,
        out_shape=jax.ShapeDtypeStruct((n_blocks, 1, 1), f32),
        scratch_shapes=[pltpu.VMEM((2 * bt, h + 2, w + 2), f32),
                        pltpu.VMEM((2 * bt, h + 4, w + 4), f32)],
        compiler_params=pltpu.CompilerParams(
            dimension_semantics=("parallel",),
            vmem_limit_bytes=64 * 1024 * 1024),
    )(x, y, r_low, r_high, i_low, i_high)
    return jnp.sum(partials)


# ----------------------- pure-jnp reference (validation) --------------------
def _decom_loss_ref(x, y, r_low, r_high, i_low, i_high):
    def pad1(a):
        return jnp.pad(a, ((0, 0), (0, 0), (1, 1), (1, 1)))

    def gradient(a, direction):
        p = pad1(a)
        if direction == "x":
            g = p[:, :, 1:, 1:] - p[:, :, 1:, :-1]
        else:
            g = p[:, :, 1:, 1:] - p[:, :, :-1, 1:]
        return jnp.abs(g)

    def avg_pool3(g):
        gp = pad1(g)
        ho, wo = gp.shape[2] - 2, gp.shape[3] - 2
        s = sum(gp[:, :, di:di + ho, dj:dj + wo]
                for di in range(3) for dj in range(3))
        return s / 9.0

    def smooth(i, r):
        rg = (0.299 * r[:, 0] + 0.587 * r[:, 1] + 0.114 * r[:, 2])[:, None]
        grad = (gradient(i, "x") * jnp.exp(-10.0 * avg_pool3(gradient(rg, "x")))
                + gradient(i, "y") * jnp.exp(-10.0 * avg_pool3(gradient(rg, "y"))))
        return jnp.mean(grad)

    i_low3 = jnp.concatenate([i_low] * 3, axis=1)
    i_high3 = jnp.concatenate([i_high] * 3, axis=1)
    l1 = lambda a, b: jnp.mean(jnp.abs(a - b))
    return (l1(r_low * i_low3, x) + l1(r_high * i_high3, y)
            + 0.001 * l1(r_high * i_low3, x) + 0.001 * l1(r_low * i_high3, y)
            + 0.1 * smooth(i_low, r_low) + 0.1 * smooth(i_high, r_high)
            + 0.01 * l1(r_low, r_high))


if __name__ == "__main__":
    key = jax.random.PRNGKey(0)
    ks = jax.random.split(key, 6)
    N, H, W = 2, 16, 16

    x      = jax.random.uniform(ks[0], (N, 3, H, W), jnp.float32)
    y      = jax.random.uniform(ks[1], (N, 3, H, W), jnp.float32)
    r_low  = jax.random.uniform(ks[2], (N, 3, H, W), jnp.float32)
    r_high = jax.random.uniform(ks[3], (N, 3, H, W), jnp.float32)
    i_low  = jax.random.uniform(ks[4], (N, 1, H, W), jnp.float32)
    i_high = jax.random.uniform(ks[5], (N, 1, H, W), jnp.float32)

    loss = jax.jit(decom_loss)(x, y, r_low, r_high, i_low, i_high)
    loss = jax.block_until_ready(loss)

    ref = _decom_loss_ref(x, y, r_low, r_high, i_low, i_high)
    assert jnp.allclose(loss, ref, rtol=1e-4, atol=1e-5), (loss, ref)
    print("KERNEL_OK")
</pallas_src>

<mosaic_0001>
module attributes {stable_mosaic.version = 11 : i64} {
  func.func @_decom_loss_kernel(%arg0: i32, %arg1: memref<2x3x16x16xf32, #tpu.memory_space<vmem>>, %arg2: memref<2x3x16x16xf32, #tpu.memory_space<vmem>>, %arg3: memref<2x3x16x16xf32, #tpu.memory_space<vmem>>, %arg4: memref<2x3x16x16xf32, #tpu.memory_space<vmem>>, %arg5: memref<2x1x16x16xf32, #tpu.memory_space<vmem>>, %arg6: memref<2x1x16x16xf32, #tpu.memory_space<vmem>>, %arg7: memref<1x1x1xf32, #tpu.memory_space<vmem>>, %arg8: memref<4x18x18xf32, #tpu.memory_space<vmem>>, %arg9: memref<4x20x20xf32, #tpu.memory_space<vmem>>) attributes {dimension_semantics = [#tpu.dimension_semantics<parallel>], iteration_bounds = array<i64: 1>, scalar_prefetch = 0 : i64, scratch_operands = 2 : i64, tpu.core_type = #tpu.core_type<tc>, window_params = [{transform_indices = @transform_0, window_bounds = array<i64: 2, 3, 16, 16>}, {transform_indices = @transform_1, window_bounds = array<i64: 2, 3, 16, 16>}, {transform_indices = @transform_2, window_bounds = array<i64: 2, 3, 16, 16>}, {transform_indices = @transform_3, window_bounds = array<i64: 2, 3, 16, 16>}, {transform_indices = @transform_4, window_bounds = array<i64: 2, 1, 16, 16>}, {transform_indices = @transform_5, window_bounds = array<i64: 2, 1, 16, 16>}, {transform_indices = @transform_6, window_bounds = array<i64: 1, 1, 1>}]} {
    %c0 = arith.constant 0 : index
    %c0_0 = arith.constant 0 : index
    %c0_1 = arith.constant 0 : index
    %c0_2 = arith.constant 0 : index
    %0 = vector.load %arg1[%c0, %c0_0, %c0_1, %c0_2] : memref<2x3x16x16xf32, #tpu.memory_space<vmem>>, vector<2x3x16x16xf32>
    %c0_3 = arith.constant 0 : index
    %c0_4 = arith.constant 0 : index
    %c0_5 = arith.constant 0 : index
    %c0_6 = arith.constant 0 : index
    %1 = vector.load %arg2[%c0_3, %c0_4, %c0_5, %c0_6] : memref<2x3x16x16xf32, #tpu.memory_space<vmem>>, vector<2x3x16x16xf32>
    %c0_7 = arith.constant 0 : index
    %c0_8 = arith.constant 0 : index
    %c0_9 = arith.constant 0 : index
    %c0_10 = arith.constant 0 : index
    %2 = vector.load %arg3[%c0_7, %c0_8, %c0_9, %c0_10] : memref<2x3x16x16xf32, #tpu.memory_space<vmem>>, vector<2x3x16x16xf32>
    %c0_11 = arith.constant 0 : index
    %c0_12 = arith.constant 0 : index
    %c0_13 = arith.constant 0 : index
    %c0_14 = arith.constant 0 : index
    %3 = vector.load %arg4[%c0_11, %c0_12, %c0_13, %c0_14] : memref<2x3x16x16xf32, #tpu.memory_space<vmem>>, vector<2x3x16x16xf32>
    %c0_15 = arith.constant 0 : index
    %c0_16 = arith.constant 0 : index
    %c0_17 = arith.constant 0 : index
    %c0_18 = arith.constant 0 : index
    %4 = vector.load %arg5[%c0_15, %c0_16, %c0_17, %c0_18] : memref<2x1x16x16xf32, #tpu.memory_space<vmem>>, vector<2x1x16x16xf32>
    %5 = vector.shape_cast %4 : vector<2x1x16x16xf32> to vector<2x16x16xf32>
    %c0_19 = arith.constant 0 : index
    %c0_20 = arith.constant 0 : index
    %c0_21 = arith.constant 0 : index
    %c0_22 = arith.constant 0 : index
    %6 = vector.load %arg6[%c0_19, %c0_20, %c0_21, %c0_22] : memref<2x1x16x16xf32, #tpu.memory_space<vmem>>, vector<2x1x16x16xf32>
    %7 = vector.shape_cast %6 : vector<2x1x16x16xf32> to vector<2x16x16xf32>
    %8 = vector.shape_cast %5 : vector<2x16x16xf32> to vector<2x1x16x16xf32>
    %9 = vector.shape_cast %7 : vector<2x16x16xf32> to vector<2x1x16x16xf32>
    %10 = vector.broadcast %8 : vector<2x1x16x16xf32> to vector<2x3x16x16xf32>
    %11 = arith.mulf %2, %10 : vector<2x3x16x16xf32>
    %12 = arith.subf %11, %0 : vector<2x3x16x16xf32>
    %13 = math.absf %12 : vector<2x3x16x16xf32>
    %14 = vector.broadcast %9 : vector<2x1x16x16xf32> to vector<2x3x16x16xf32>
    %15 = arith.mulf %3, %14 : vector<2x3x16x16xf32>
    %16 = arith.subf %15, %1 : vector<2x3x16x16xf32>
    %17 = math.absf %16 : vector<2x3x16x16xf32>
    %18 = arith.addf %13, %17 : vector<2x3x16x16xf32>
    %19 = vector.broadcast %8 : vector<2x1x16x16xf32> to vector<2x3x16x16xf32>
    %20 = arith.mulf %3, %19 : vector<2x3x16x16xf32>
    %21 = arith.subf %20, %0 : vector<2x3x16x16xf32>
    %22 = math.absf %21 : vector<2x3x16x16xf32>
    %cst = arith.constant 1.000000e-03 : f32
    %23 = vector.broadcast %cst : f32 to vector<2x3x16x16xf32>
    %24 = arith.mulf %23, %22 : vector<2x3x16x16xf32>
    %25 = arith.addf %18, %24 : vector<2x3x16x16xf32>
    %26 = vector.broadcast %9 : vector<2x1x16x16xf32> to vector<2x3x16x16xf32>
    %27 = arith.mulf %2, %26 : vector<2x3x16x16xf32>
    %28 = arith.subf %27, %1 : vector<2x3x16x16xf32>
    %29 = math.absf %28 : vector<2x3x16x16xf32>
    %cst_23 = arith.constant 1.000000e-03 : f32
    %30 = vector.broadcast %cst_23 : f32 to vector<2x3x16x16xf32>
    %31 = arith.mulf %30, %29 : vector<2x3x16x16xf32>
    %32 = arith.addf %25, %31 : vector<2x3x16x16xf32>
    %33 = arith.subf %2, %3 : vector<2x3x16x16xf32>
    %34 = math.absf %33 : vector<2x3x16x16xf32>
    %cst_24 = arith.constant 0.00999999977 : f32
    %35 = vector.broadcast %cst_24 : f32 to vector<2x3x16x16xf32>
    %36 = arith.mulf %35, %34 : vector<2x3x16x16xf32>
    %37 = arith.addf %32, %36 : vector<2x3x16x16xf32>
    %38 = vector.shape_cast %37 : vector<2x3x16x16xf32> to vector<1x2x3x16x16xf32>
    %cst_25 = arith.constant dense<0.000000e+00> : vector<1xf32>
    %39 = vector.multi_reduction <add>, %38, %cst_25 [1, 2, 3, 4] : vector<1x2x3x16x16xf32> to vector<1xf32>
    %40 = vector.shape_cast %39 : vector<1xf32> to vector<1x1x1x1x1xf32>
    %41 = vector.extract %40[0, 0, 0, 0, 0] : f32 from vector<1x1x1x1x1xf32>
    %42 = vector.extract_strided_slice %2 {offsets = [0, 0, 0, 0], sizes = [2, 1, 16, 16], strides = [1, 1, 1, 1]} : vector<2x3x16x16xf32> to vector<2x1x16x16xf32>
    %43 = vector.shape_cast %42 : vector<2x1x16x16xf32> to vector<2x16x16xf32>
    %cst_26 = arith.constant 2.990000e-01 : f32
    %44 = vector.broadcast %cst_26 : f32 to vector<2x16x16xf32>
    %45 = arith.mulf %44, %43 : vector<2x16x16xf32>
    %46 = vector.extract_strided_slice %2 {offsets = [0, 1, 0, 0], sizes = [2, 1, 16, 16], strides = [1, 1, 1, 1]} : vector<2x3x16x16xf32> to vector<2x1x16x16xf32>
    %47 = vector.shape_cast %46 : vector<2x1x16x16xf32> to vector<2x16x16xf32>
    %cst_27 = arith.constant 5.870000e-01 : f32
    %48 = vector.broadcast %cst_27 : f32 to vector<2x16x16xf32>
    %49 = arith.mulf %48, %47 : vector<2x16x16xf32>
    %50 = arith.addf %45, %49 : vector<2x16x16xf32>
    %51 = vector.extract_strided_slice %2 {offsets = [0, 2, 0, 0], sizes = [2, 1, 16, 16], strides = [1, 1, 1, 1]} : vector<2x3x16x16xf32> to vector<2x1x16x16xf32>
    %52 = vector.shape_cast %51 : vector<2x1x16x16xf32> to vector<2x16x16xf32>
    %cst_28 = arith.constant 1.140000e-01 : f32
    %53 = vector.broadcast %cst_28 : f32 to vector<2x16x16xf32>
    %54 = arith.mulf %53, %52 : vector<2x16x16xf32>
    %55 = arith.addf %50, %54 : vector<2x16x16xf32>
    %56 = vector.extract_strided_slice %3 {offsets = [0, 0, 0, 0], sizes = [2, 1, 16, 16], strides = [1, 1, 1, 1]} : vector<2x3x16x16xf32> to vector<2x1x16x16xf32>
    %57 = vector.shape_cast %56 : vector<2x1x16x16xf32> to vector<2x16x16xf32>
    %cst_29 = arith.constant 2.990000e-01 : f32
    %58 = vector.broadcast %cst_29 : f32 to vector<2x16x16xf32>
    %59 = arith.mulf %58, %57 : vector<2x16x16xf32>
    %60 = vector.extract_strided_slice %3 {offsets = [0, 1, 0, 0], sizes = [2, 1, 16, 16], strides = [1, 1, 1, 1]} : vector<2x3x16x16xf32> to vector<2x1x16x16xf32>
    %61 = vector.shape_cast %60 : vector<2x1x16x16xf32> to vector<2x16x16xf32>
    %cst_30 = arith.constant 5.870000e-01 : f32
    %62 = vector.broadcast %cst_30 : f32 to vector<2x16x16xf32>
    %63 = arith.mulf %62, %61 : vector<2x16x16xf32>
    %64 = arith.addf %59, %63 : vector<2x16x16xf32>
    %65 = vector.extract_strided_slice %3 {offsets = [0, 2, 0, 0], sizes = [2, 1, 16, 16], strides = [1, 1, 1, 1]} : vector<2x3x16x16xf32> to vector<2x1x16x16xf32>
    %66 = vector.shape_cast %65 : vector<2x1x16x16xf32> to vector<2x16x16xf32>
    %cst_31 = arith.constant 1.140000e-01 : f32
    %67 = vector.broadcast %cst_31 : f32 to vector<2x16x16xf32>
    %68 = arith.mulf %67, %66 : vector<2x16x16xf32>
    %69 = arith.addf %64, %68 : vector<2x16x16xf32>
    %c0_32 = arith.constant 0 : index
    %c1 = arith.constant 1 : index
    %c1_33 = arith.constant 1 : index
    %70 = vector.load %arg8[%c0_32, %c1, %c1_33] : memref<4x18x18xf32, #tpu.memory_space<vmem>>, vector<2x16x16xf32>
    tpu.vector_store %arg8[%c0_32, %c1, %c1_33], %5 {strides = array<i32>} : memref<4x18x18xf32, #tpu.memory_space<vmem>>, vector<2x16x16xf32>,
    %c2 = arith.constant 2 : index
    %c1_34 = arith.constant 1 : index
    %c1_35 = arith.constant 1 : index
    %71 = vector.load %arg8[%c2, %c1_34, %c1_35] : memref<4x18x18xf32, #tpu.memory_space<vmem>>, vector<2x16x16xf32>
    tpu.vector_store %arg8[%c2, %c1_34, %c1_35], %7 {strides = array<i32>} : memref<4x18x18xf32, #tpu.memory_space<vmem>>, vector<2x16x16xf32>,
    %cst_36 = arith.constant 0.000000e+00 : f32
    %72 = vector.broadcast %cst_36 : f32 to vector<4x1x18xf32>
    %c0_37 = arith.constant 0 : index
    %c0_38 = arith.constant 0 : index
    %c0_39 = arith.constant 0 : index
    %73 = vector.load %arg8[%c0_37, %c0_38, %c0_39] : memref<4x18x18xf32, #tpu.memory_space<vmem>>, vector<4x1x18xf32>
    tpu.vector_store %arg8[%c0_37, %c0_38, %c0_39], %72 {strides = array<i32>} : memref<4x18x18xf32, #tpu.memory_space<vmem>>, vector<4x1x18xf32>,
    %cst_40 = arith.constant 0.000000e+00 : f32
    %74 = vector.broadcast %cst_40 : f32 to vector<4x1x18xf32>
    %c0_41 = arith.constant 0 : index
    %c17 = arith.constant 17 : index
    %c0_42 = arith.constant 0 : index
    %75 = vector.load %arg8[%c0_41, %c17, %c0_42] : memref<4x18x18xf32, #tpu.memory_space<vmem>>, vector<4x1x18xf32>
    tpu.vector_store %arg8[%c0_41, %c17, %c0_42], %74 {strides = array<i32>} : memref<4x18x18xf32, #tpu.memory_space<vmem>>, vector<4x1x18xf32>,
    %cst_43 = arith.constant 0.000000e+00 : f32
    %76 = vector.broadcast %cst_43 : f32 to vector<4x18x1xf32>
    %c0_44 = arith.constant 0 : index
    %c0_45 = arith.constant 0 : index
    %c0_46 = arith.constant 0 : index
    %77 = vector.load %arg8[%c0_44, %c0_45, %c0_46] : memref<4x18x18xf32, #tpu.memory_space<vmem>>, vector<4x18x1xf32>
    tpu.vector_store %arg8[%c0_44, %c0_45, %c0_46], %76 {strides = array<i32>} : memref<4x18x18xf32, #tpu.memory_space<vmem>>, vector<4x18x1xf32>,
    %cst_47 = arith.constant 0.000000e+00 : f32
    %78 = vector.broadcast %cst_47 : f32 to vector<4x18x1xf32>
    %c0_48 = arith.constant 0 : index
    %c0_49 = arith.constant 0 : index
    %c17_50 = arith.constant 17 : index
    %79 = vector.load %arg8[%c0_48, %c0_49, %c17_50] : memref<4x18x18xf32, #tpu.memory_space<vmem>>, vector<4x18x1xf32>
    tpu.vector_store %arg8[%c0_48, %c0_49, %c17_50], %78 {strides = array<i32>} : memref<4x18x18xf32, #tpu.memory_space<vmem>>, vector<4x18x1xf32>,
    %c0_51 = arith.constant 0 : index
    %c2_52 = arith.constant 2 : index
    %c2_53 = arith.constant 2 : index
    %80 = vector.load %arg9[%c0_51, %c2_52, %c2_53] : memref<4x20x20xf32, #tpu.memory_space<vmem>>, vector<2x16x16xf32>
    tpu.vector_store %arg9[%c0_51, %c2_52, %c2_53], %55 {strides = array<i32>} : memref<4x20x20xf32, #tpu.memory_space<vmem>>, vector<2x16x16xf32>,
    %c2_54 = arith.constant 2 : index
    %c2_55 = arith.constant 2 : index
    %c2_56 = arith.constant 2 : index
    %81 = vector.load %arg9[%c2_54, %c2_55, %c2_56] : memref<4x20x20xf32, #tpu.memory_space<vmem>>, vector<2x16x16xf32>
    tpu.vector_store %arg9[%c2_54, %c2_55, %c2_56], %69 {strides = array<i32>} : memref<4x20x20xf32, #tpu.memory_space<vmem>>, vector<2x16x16xf32>,
    %cst_57 = arith.constant 0.000000e+00 : f32
    %82 = vector.broadcast %cst_57 : f32 to vector<4x2x20xf32>
    %c0_58 = arith.constant 0 : index
    %c0_59 = arith.constant 0 : index
    %c0_60 = arith.constant 0 : index
    %83 = vector.load %arg9[%c0_58, %c0_59, %c0_60] : memref<4x20x20xf32, #tpu.memory_space<vmem>>, vector<4x2x20xf32>
    tpu.vector_store %arg9[%c0_58, %c0_59, %c0_60], %82 {strides = array<i32>} : memref<4x20x20xf32, #tpu.memory_space<vmem>>, vector<4x2x20xf32>,
    %cst_61 = arith.constant 0.000000e+00 : f32
    %84 = vector.broadcast %cst_61 : f32 to vector<4x2x20xf32>
    %c0_62 = arith.constant 0 : index
    %c18 = arith.constant 18 : index
    %c0_63 = arith.constant 0 : index
    %85 = vector.load %arg9[%c0_62, %c18, %c0_63] : memref<4x20x20xf32, #tpu.memory_space<vmem>>, vector<4x2x20xf32>
    tpu.vector_store %arg9[%c0_62, %c18, %c0_63], %84 {strides = array<i32>} : memref<4x20x20xf32, #tpu.memory_space<vmem>>, vector<4x2x20xf32>,
    %cst_64 = arith.constant 0.000000e+00 : f32
    %86 = vector.broadcast %cst_64 : f32 to vector<4x20x2xf32>
    %c0_65 = arith.constant 0 : index
    %c0_66 = arith.constant 0 : index
    %c0_67 = arith.constant 0 : index
    %87 = vector.load %arg9[%c0_65, %c0_66, %c0_67] : memref<4x20x20xf32, #tpu.memory_space<vmem>>, vector<4x20x2xf32>
    tpu.vector_store %arg9[%c0_65, %c0_66, %c0_67], %86 {strides = array<i32>} : memref<4x20x20xf32, #tpu.memory_space<vmem>>, vector<4x20x2xf32>,
    %cst_68 = arith.constant 0.000000e+00 : f32
    %88 = vector.broadcast %cst_68 : f32 to vector<4x20x2xf32>
    %c0_69 = arith.constant 0 : index
    %c0_70 = arith.constant 0 : index
    %c18_71 = arith.constant 18 : index
    %89 = vector.load %arg9[%c0_69, %c0_70, %c18_71] : memref<4x20x20xf32, #tpu.memory_space<vmem>>, vector<4x20x2xf32>
    tpu.vector_store %arg9[%c0_69, %c0_70, %c18_71], %88 {strides = array<i32>} : memref<4x20x20xf32, #tpu.memory_space<vmem>>, vector<4x20x2xf32>,
    %c0_72 = arith.constant 0 : index
    %c1_73 = arith.constant 1 : index
    %c1_74 = arith.constant 1 : index
    %90 = vector.load %arg8[%c0_72, %c1_73, %c1_74] : memref<4x18x18xf32, #tpu.memory_space<vmem>>, vector<4x17x17xf32>
    %c0_75 = arith.constant 0 : index
    %c1_76 = arith.constant 1 : index
    %c0_77 = arith.constant 0 : index
    %91 = vector.load %arg8[%c0_75, %c1_76, %c0_77] : memref<4x18x18xf32, #tpu.memory_space<vmem>>, vector<4x17x17xf32>
    %92 = arith.subf %90, %91 : vector<4x17x17xf32>
    %93 = math.absf %92 : vector<4x17x17xf32>
    %c0_78 = arith.constant 0 : index
    %c0_79 = arith.constant 0 : index
    %c1_80 = arith.constant 1 : index
    %94 = vector.load %arg8[%c0_78, %c0_79, %c1_80] : memref<4x18x18xf32, #tpu.memory_space<vmem>>, vector<4x17x17xf32>
    %95 = arith.subf %90, %94 : vector<4x17x17xf32>
    %96 = math.absf %95 : vector<4x17x17xf32>
    %c0_81 = arith.constant 0 : index
    %c1_82 = arith.constant 1 : index
    %c1_83 = arith.constant 1 : index
    %97 = vector.load %arg9[%c0_81, %c1_82, %c1_83] : memref<4x20x20xf32, #tpu.memory_space<vmem>>, vector<4x19x19xf32>
    %c0_84 = arith.constant 0 : index
    %c1_85 = arith.constant 1 : index
    %c0_86 = arith.constant 0 : index
    %98 = vector.load %arg9[%c0_84, %c1_85, %c0_86] : memref<4x20x20xf32, #tpu.memory_space<vmem>>, vector<4x19x19xf32>
    %99 = arith.subf %97, %98 : vector<4x19x19xf32>
    %100 = math.absf %99 : vector<4x19x19xf32>
    %c0_87 = arith.constant 0 : index
    %c0_88 = arith.constant 0 : index
    %c1_89 = arith.constant 1 : index
    %101 = vector.load %arg9[%c0_87, %c0_88, %c1_89] : memref<4x20x20xf32, #tpu.memory_space<vmem>>, vector<4x19x19xf32>
    %102 = arith.subf %97, %101 : vector<4x19x19xf32>
    %103 = math.absf %102 : vector<4x19x19xf32>
    %104 = vector.extract_strided_slice %100 {offsets = [0, 0, 0], sizes = [4, 17, 19], strides = [1, 1, 1]} : vector<4x19x19xf32> to vector<4x17x19xf32>
    %105 = vector.extract_strided_slice %100 {offsets = [0, 1, 0], sizes = [4, 17, 19], strides = [1, 1, 1]} : vector<4x19x19xf32> to vector<4x17x19xf32>
    %106 = arith.addf %104, %105 : vector<4x17x19xf32>
    %107 = vector.extract_strided_slice %100 {offsets = [0, 2, 0], sizes = [4, 17, 19], strides = [1, 1, 1]} : vector<4x19x19xf32> to vector<4x17x19xf32>
    %108 = arith.addf %106, %107 : vector<4x17x19xf32>
    %109 = vector.extract_strided_slice %108 {offsets = [0, 0, 0], sizes = [4, 17, 17], strides = [1, 1, 1]} : vector<4x17x19xf32> to vector<4x17x17xf32>
    %110 = vector.extract_strided_slice %108 {offsets = [0, 0, 1], sizes = [4, 17, 17], strides = [1, 1, 1]} : vector<4x17x19xf32> to vector<4x17x17xf32>
    %111 = arith.addf %109, %110 : vector<4x17x17xf32>
    %112 = vector.extract_strided_slice %108 {offsets = [0, 0, 2], sizes = [4, 17, 17], strides = [1, 1, 1]} : vector<4x17x19xf32> to vector<4x17x17xf32>
    %113 = arith.addf %111, %112 : vector<4x17x17xf32>
    %cst_90 = arith.constant 0.111111112 : f32
    %114 = vector.broadcast %cst_90 : f32 to vector<4x17x17xf32>
    %115 = arith.mulf %113, %114 : vector<4x17x17xf32>
    %cst_91 = arith.constant -1.000000e+01 : f32
    %116 = vector.broadcast %cst_91 : f32 to vector<4x17x17xf32>
    %117 = arith.mulf %116, %115 : vector<4x17x17xf32>
    %118 = math.exp %117 : vector<4x17x17xf32>
    %119 = arith.mulf %93, %118 : vector<4x17x17xf32>
    %120 = vector.extract_strided_slice %103 {offsets = [0, 0, 0], sizes = [4, 17, 19], strides = [1, 1, 1]} : vector<4x19x19xf32> to vector<4x17x19xf32>
    %121 = vector.extract_strided_slice %103 {offsets = [0, 1, 0], sizes = [4, 17, 19], strides = [1, 1, 1]} : vector<4x19x19xf32> to vector<4x17x19xf32>
    %122 = arith.addf %120, %121 : vector<4x17x19xf32>
    %123 = vector.extract_strided_slice %103 {offsets = [0, 2, 0], sizes = [4, 17, 19], strides = [1, 1, 1]} : vector<4x19x19xf32> to vector<4x17x19xf32>
    %124 = arith.addf %122, %123 : vector<4x17x19xf32>
    %125 = vector.extract_strided_slice %124 {offsets = [0, 0, 0], sizes = [4, 17, 17], strides = [1, 1, 1]} : vector<4x17x19xf32> to vector<4x17x17xf32>
    %126 = vector.extract_strided_slice %124 {offsets = [0, 0, 1], sizes = [4, 17, 17], strides = [1, 1, 1]} : vector<4x17x19xf32> to vector<4x17x17xf32>
    %127 = arith.addf %125, %126 : vector<4x17x17xf32>
    %128 = vector.extract_strided_slice %124 {offsets = [0, 0, 2], sizes = [4, 17, 17], strides = [1, 1, 1]} : vector<4x17x19xf32> to vector<4x17x17xf32>
    %129 = arith.addf %127, %128 : vector<4x17x17xf32>
    %cst_92 = arith.constant 0.111111112 : f32
    %130 = vector.broadcast %cst_92 : f32 to vector<4x17x17xf32>
    %131 = arith.mulf %129, %130 : vector<4x17x17xf32>
    %cst_93 = arith.constant -1.000000e+01 : f32
    %132 = vector.broadcast %cst_93 : f32 to vector<4x17x17xf32>
    %133 = arith.mulf %132, %131 : vector<4x17x17xf32>
    %134 = math.exp %133 : vector<4x17x17xf32>
    %135 = arith.mulf %96, %134 : vector<4x17x17xf32>
    %136 = arith.addf %119, %135 : vector<4x17x17xf32>
    %137 = vector.shape_cast %136 : vector<4x17x17xf32> to vector<1x4x17x17xf32>
    %cst_94 = arith.constant dense<0.000000e+00> : vector<1xf32>
    %138 = vector.multi_reduction <add>, %137, %cst_94 [1, 2, 3] : vector<1x4x17x17xf32> to vector<1xf32>
    %139 = vector.shape_cast %138 : vector<1xf32> to vector<1x1x1x1xf32>
    %140 = vector.extract %139[0, 0, 0, 0] : f32 from vector<1x1x1x1xf32>
    %cst_95 = arith.constant 6.51041686E-4 : f32
    %141 = arith.mulf %41, %cst_95 : f32
    %cst_96 = arith.constant 1.73010383E-4 : f32
    %142 = arith.mulf %140, %cst_96 : f32
    %143 = arith.addf %141, %142 : f32
    %cst_97 = arith.constant 0.000000e+00 : f32
    %144 = vector.broadcast %cst_97 : f32 to vector<1x1x1xf32>
    %145 = vector.broadcast %143 : f32 to vector<1x1x1xf32>
    %146 = arith.addf %144, %145 : vector<1x1x1xf32>
    %c0_98 = arith.constant 0 : index
    %c0_99 = arith.constant 0 : index
    %c0_100 = arith.constant 0 : index
    %147 = vector.load %arg7[%c0_98, %c0_99, %c0_100] : memref<1x1x1xf32, #tpu.memory_space<vmem>>, vector<1x1x1xf32>
    tpu.vector_store %arg7[%c0_98, %c0_99, %c0_100], %146 {strides = array<i32>} : memref<1x1x1xf32, #tpu.memory_space<vmem>>, vector<1x1x1xf32>,
    return
  }
  func.func @transform_0(%arg0: i32) -> (i32, i32, i32, i32) {
    %c0_i32 = arith.constant 0 : i32
    %c0_i32_0 = arith.constant 0 : i32
    %c0_i32_1 = arith.constant 0 : i32
    %c0_i32_2 = arith.constant 0 : i32
    return %arg0, %c0_i32, %c0_i32_0, %c0_i32_1 : i32, i32, i32, i32
  }
  func.func @transform_1(%arg0: i32) -> (i32, i32, i32, i32) {
    %c0_i32 = arith.constant 0 : i32
    %c0_i32_0 = arith.constant 0 : i32
    %c0_i32_1 = arith.constant 0 : i32
    %c0_i32_2 = arith.constant 0 : i32
    return %arg0, %c0_i32, %c0_i32_0, %c0_i32_1 : i32, i32, i32, i32
  }
  func.func @transform_2(%arg0: i32) -> (i32, i32, i32, i32) {
    %c0_i32 = arith.constant 0 : i32
    %c0_i32_0 = arith.constant 0 : i32
    %c0_i32_1 = arith.constant 0 : i32
    %c0_i32_2 = arith.constant 0 : i32
    return %arg0, %c0_i32, %c0_i32_0, %c0_i32_1 : i32, i32, i32, i32
  }
  func.func @transform_3(%arg0: i32) -> (i32, i32, i32, i32) {
    %c0_i32 = arith.constant 0 : i32
    %c0_i32_0 = arith.constant 0 : i32
    %c0_i32_1 = arith.constant 0 : i32
    %c0_i32_2 = arith.constant 0 : i32
    return %arg0, %c0_i32, %c0_i32_0, %c0_i32_1 : i32, i32, i32, i32
  }
  func.func @transform_4(%arg0: i32) -> (i32, i32, i32, i32) {
    %c0_i32 = arith.constant 0 : i32
    %c0_i32_0 = arith.constant 0 : i32
    %c0_i32_1 = arith.constant 0 : i32
    %c0_i32_2 = arith.constant 0 : i32
    return %arg0, %c0_i32, %c0_i32_0, %c0_i32_1 : i32, i32, i32, i32
  }
  func.func @transform_5(%arg0: i32) -> (i32, i32, i32, i32) {
    %c0_i32 = arith.constant 0 : i32
    %c0_i32_0 = arith.constant 0 : i32
    %c0_i32_1 = arith.constant 0 : i32
    %c0_i32_2 = arith.constant 0 : i32
    return %arg0, %c0_i32, %c0_i32_0, %c0_i32_1 : i32, i32, i32, i32
  }
  func.func @transform_6(%arg0: i32) -> (i32, i32, i32) {
    %c0_i32 = arith.constant 0 : i32
    %c0_i32_0 = arith.constant 0 : i32
    %c0_i32_1 = arith.constant 0 : i32
    return %arg0, %c0_i32, %c0_i32_0 : i32, i32, i32
  }
}

</mosaic_0001>

<bundles_post_ra>
// kernel: decom_loss.1
= control target key start
LH: loop header
LB: loop body
LE: loop exit
PB: predicated region body
PF: predicated region fallthrough
CT: control target
= control target key end

     0   :  { %11 = vsyncpa [#allocation5], 0  ;;  %s2898_s0 = inlined_call_operand.hbm [shape: f32[2,3,16,16], index: 0, kind: input, shape index: {}]   ;;  %s2899_s1 = inlined_call_operand.hbm [shape: f32[2,3,16,16], index: 1, kind: input, shape index: {}]   ;;  %s2900_s2 = inlined_call_operand.hbm [shape: f32[2,3,16,16], index: 2, kind: input, shape index: {}]   ;;  %s2901_s3 = inlined_call_operand.hbm [shape: f32[2,3,16,16], index: 3, kind: input, shape index: {}]   ;;  %s2902_s4 = inlined_call_operand.hbm [shape: f32[2,1,16,16], index: 4, kind: input, shape index: {}]   ;;  %s2903_s5 = inlined_call_operand.hbm [shape: f32[2,1,16,16], index: 5, kind: input, shape index: {}]   ;;  %s2904_s6 = inlined_call_operand.hbm [shape: f32[1,1,1], index: 6, kind: output, shape index: {}]  }
   0x1   :  { %12 = vsyncpa [#allocation8], 0 }
   0x2   :  { %13 = vsyncpa [#allocation11], 0 }
   0x3   :  { %14 = vsyncpa [#allocation14], 0 }
   0x4   :  { %15 = vsyncpa [#allocation6], 0  ;;  %s33_s23 = sshll.u32 %s2899_s1, 4  ;;  %s1800_s24 = smov [#allocation7]   ;;  %s34_s23 = int_to_ptr.hbm [resolvable:$true] %s33_s23 }
   0x5   :  { %s35_s25 = sshll.u32 %s1800_s24, 4  ;;  %s59_s28 = sshll.u32 %s2901_s3, 4  ;;  %s36_s25 = int_to_ptr.vmem [resolvable:$true] %s35_s25  ;;  %s60_s28 = int_to_ptr.hbm [resolvable:$true] %s59_s28 }
   0x6   :  { %s1801_s29 = smov 128   ;;  %s1802_s30 = smov 8  }
   0x7   :  { %41 = dma.hbm_to_vmem [thread:$0]  %s34_s23, 1536, %s36_s25, [#allocation8], %s1801_s29, %s1801_s29, %s1802_s30  }
   0x8   :  { %s1803_s7 = smov [#allocation10]   ;;  %s20_s1 = sshll.u32 %s2898_s0, 4  ;;  %s21_s1 = int_to_ptr.hbm [resolvable:$true] %s20_s1 }
   0x9   :  { %s61_s8 = sshll.u32 %s1803_s7, 4  ;;  %s46_s12 = sshll.u32 %s2900_s2, 4  ;;  %s62_s8 = int_to_ptr.vmem [resolvable:$true] %s61_s8  ;;  %s47_s12 = int_to_ptr.hbm [resolvable:$true] %s46_s12 }
   0xa   :  { %67 = dma.hbm_to_vmem [thread:$0]  %s60_s28, 1536, %s62_s8, [#allocation11], %s1801_s29, %s1801_s29, %s1802_s30  }
   0xb   :  { %s1804_s13 = smov [#allocation4]   ;;  %s1805_s15 = smov [#allocation9]  }
   0xc   :  { %s22_s14 = sshll.u32 %s1804_s13, 4  ;;  %s48_s0 = sshll.u32 %s1805_s15, 4  ;;  %s23_s14 = int_to_ptr.vmem [resolvable:$true] %s22_s14  ;;  %s49_s0 = int_to_ptr.vmem [resolvable:$true] %s48_s0 }
   0xd   :  { %28 = dma.hbm_to_vmem [thread:$0]  %s21_s1, 1536, %s23_s14, [#allocation5], %s1801_s29, %s1801_s29, %s1802_s30  }
   0xe   :  { %s72_s18 = sshll.u32 %s2902_s4, 4  ;;  %s85_s20 = sshll.u32 %s2903_s5, 4  ;;  %s73_s18 = int_to_ptr.hbm [resolvable:$true] %s72_s18  ;;  %s86_s20 = int_to_ptr.hbm [resolvable:$true] %s85_s20 }
   0xf   :  { %54 = dma.hbm_to_vmem [thread:$0]  %s47_s12, 1536, %s49_s0, [#allocation8], %s1801_s29, %s1801_s29, %s1802_s30  }
  0x10   :  { %s1806_s21 = smov [#allocation12]   ;;  %s1807_s23 = smov [#allocation13]  }
  0x11   :  { %s74_s22 = sshll.u32 %s1806_s21, 4  ;;  %s87_s4 = sshll.u32 %s1807_s23, 4  ;;  %s75_s22 = int_to_ptr.vmem [resolvable:$true] %s74_s22  ;;  %s88_s4 = int_to_ptr.vmem [resolvable:$true] %s87_s4 }
  0x12   :  { %80 = dma.hbm_to_vmem [thread:$0]  %s73_s18, 512, %s75_s22, [#allocation11], %s1801_s29, %s1801_s29, %s1802_s30  }
  0x13   :  { %93 = dma.hbm_to_vmem [thread:$0]  %s86_s20, 512, %s88_s4, [#allocation14], %s1801_s29, %s1801_s29, %s1802_s30  }
  0x14   :  { %1790 = dma.done.wait [#allocation5], 1536  }
  0x15   :  { %1791 = vsyncadd [#allocation5], 4294965760 }
  0x16   :  { %1792 = dma.done.wait [#allocation8], 3072  }
  0x17   :  { %1793 = vsyncadd [#allocation8], 4294964224 }
  0x18   :  { %1794 = dma.done.wait [#allocation11], 2048  }
  0x19   :  { %1795 = vsyncadd [#allocation11], 4294965248 }
  0x1a   :  { %1796 = dma.done.wait [#allocation14], 512  }
  0x1b   :  { %1797 = vsyncadd [#allocation14], 4294966784  ;;  %v1885_v0 = vld [vmem:[#allocation10] sm:$0xff]  ;;  %v1887_v1 = vld [vmem:[#allocation10 + $0x10] sm:$0xff]  ;;  %s1808_s5 = smov 2   ;;  %vm426_vm0 = vcmask 130048  }
  0x1c   :  { %v1889_v2 = vld [vmem:[#allocation10 + $0x20] sm:$0xff]  ;;  %v479_v5 = vmul.f32 0.299, %v1885_v0  ;;  %v483_v6 = vmul.f32 0.587, %v1887_v1  ;;  %v1907_v12 = vld [vmem:[#allocation4 + $0x10] sm:$0xff] }
  0x1d   :  { %v1891_v3 = vld [vmem:[#allocation12] sm:$0xff]  ;;  %v491_v15 = vmul.f32 0.114, %v1889_v2  ;;  %v1914_v17 = vld [vmem:[#allocation7 + $0x10] sm:$0xff]  ;;  %v1924_v23 = vld [vmem:[#allocation10 + $0x8] sm:$0xff]  ;;  %vm620_vm1 = vcmask 156672  }
  0x1e   :  { %2910 = vst [vmem:[#allocation21_spill] sm:$0xff] %v1891_v3  ;;  %v1893_v4 = vld [vmem:[#allocation13] sm:$0xff]  ;;  %v260_v9 = vmul.f32 %v1891_v3, %v1887_v1  ;;  %v262_v10 = vmul.f32 %v1891_v3, %v1889_v2  ;;  %v487_v14 = vadd.f32 %v483_v6, %v479_v5  ;;  %v258_v20 = vmul.f32 %v1891_v3, %v1885_v0  ;;  %v1929_v28 = vld [vmem:[#allocation13 + $0x8] sm:$0xff]  ;;  %v1932_v30 = vld [vmem:[#allocation10 + $0x18] sm:$0xff]  ;;  %s1810_s24 = smov 1   ;;  %s1811_s25 = smov 127  }
  0x1f   :  { %2911 = vst [vmem:[#allocation22_spill] sm:$0xff] %v1893_v4  ;;  %v212_v7 = vmul.f32 %v1893_v4, %v1887_v1  ;;  %v214_v8 = vmul.f32 %v1893_v4, %v1889_v2  ;;  %v1905_v11 = vld [vmem:[#allocation4] sm:$0xff]  ;;  %v210_v19 = vmul.f32 %v1893_v4, %v1885_v0  ;;  %v1934_v31 = vld [vmem:[#allocation12 + $0x8] sm:$0xff]  ;;  %v211_v34 = vmul.f32 %v1929_v28, %v1924_v23  ;;  %v1958_v48 = vld [vmem:[#allocation4 + $0x18] sm:$0xff]  ;;  %s1812_s26 = smov 126   ;;  %s1813_s30 = smov [#allocation15]  }
  0x20   :  { %v1909_v13 = vld [vmem:[#allocation4 + $0x20] sm:$0xff]  ;;  %v272_v22 = vsub.f32 %v260_v9, %v1907_v12  ;;  %v495_v24 = vadd.f32 %v491_v15, %v487_v14  ;;  %v270_v26 = vsub.f32 %v258_v20, %v1905_v11  ;;  %2912 = vst [vmem:[#allocation23_spill] sm:$0xff] %v1929_v28  ;;  %v1939_v33 = vld [vmem:[#allocation10 + $0x28] sm:$0xff]  ;;  %v480_v35 = vmul.f32 0.299, %v1924_v23  ;;  %v1964_v52 = vld [vmem:[#allocation7 + $0x18] sm:$0xff] }
  0x21   :  { %v1912_v16 = vld [vmem:[#allocation7] sm:$0xff]  ;;  %v224_v21 = vsub.f32 %v212_v7, %v1914_v17  ;;  %v274_v27 = vsub.f32 %v262_v10, %v1909_v13  ;;  %2913 = vst [vmem:[#allocation24_spill] sm:$0xff] %v1934_v31  ;;  %v1944_v38 = vld [vmem:[#allocation7 + $0x8] sm:$0xff]  ;;  %v259_v41 = vmul.f32 %v1934_v31, %v1924_v23  ;;  %v484_v42 = vmul.f32 0.587, %v1932_v30  ;;  %v144_v54 = vld [vmem:[#allocation9 + $0x10] sm:$0xff] }
  0x22   :  { %v1916_v18 = vld [vmem:[#allocation7 + $0x20] sm:$0xff]  ;;  %v222_v29 = vsub.f32 %v210_v19, %v1912_v16  ;;  %603 = vrot.lane.b32.xlu2 %v495_v24, %s1808_s5  ;;  %v282_v36 = vand.u32 2147483647, %v270_v26  ;;  %v284_v37 = vand.u32 2147483647, %v272_v22  ;;  %v213_v44 = vmul.f32 %v1929_v28, %v1932_v30  ;;  %v1956_v47 = vld [vmem:[#allocation4 + $0x8] sm:$0xff] }
  0x23   :  { %v226_v25 = vsub.f32 %v214_v8, %v1916_v18  ;;  %v1937_v32 = vand.u32 2147483647, %v224_v21  ;;  %v286_v40 = vand.u32 2147483647, %v274_v27  ;;  %v261_v45 = vmul.f32 %v1934_v31, %v1932_v30  ;;  %v146_v55 = vld [vmem:[#allocation9 + $0x20] sm:$0xff]  ;;  %v1967_v58 = vld [vmem:[#allocation4 + $0x28] sm:$0xff] }
  0x24   :  { %v234_v43 = vand.u32 2147483647, %v222_v29  ;;  %v492_v46 = vmul.f32 0.114, %v1939_v33  ;;  %v215_v49 = vmul.f32 %v1929_v28, %v1939_v33  ;;  %v263_v50 = vmul.f32 %v1934_v31, %v1939_v33  ;;  %v1969_v59 = vld [vmem:[#allocation7 + $0x28] sm:$0xff]  ;;  %v142_v63 = vld [vmem:[#allocation9] sm:$0xff] }
  0x25   :  { %v1946_v39 = vand.u32 2147483647, %v226_v25  ;;  %v488_v51 = vadd.f32 %v484_v42, %v480_v35  ;;  %v223_v53 = vsub.f32 %v211_v34, %v1944_v38  ;;  %v294_v56 = vmul.f32 0.001, %v282_v36  ;;  %s1541_s7 = sshll.u32 %s1813_s30, 4  ;;  %s1543_s1 = sshll.u32 %s2904_s6, 4  ;;  %s1542_s7 = int_to_ptr.vmem [resolvable:$true] %s1541_s7  ;;  %s1544_s1 = int_to_ptr.hbm [resolvable:$true] %s1543_s1 }
  0x26   :  { %v296_v57 = vmul.f32 0.001, %v284_v37  ;;  %v298_v60 = vmul.f32 0.001, %v286_v40  ;;  %v271_v62 = vsub.f32 %v259_v41, %v1956_v47  ;;  %v176_v5 = vmul.f32 %v1891_v3, %v144_v54 }
  0x27   :  { %v496_v61 = vadd.f32 %v492_v46, %v488_v51  ;;  %v225_v6 = vsub.f32 %v213_v44, %v1964_v52  ;;  %v273_v7 = vsub.f32 %v261_v45, %v1958_v48  ;;  %v178_v8 = vmul.f32 %v1891_v3, %v146_v55 }
  0x28   :  { %v320_v9 = vmul.f32 %v1893_v4, %v144_v54  ;;  %v227_v10 = vsub.f32 %v215_v49, %v1969_v59  ;;  %v1979_v14 = vand.u32 2147483647, %v223_v53  ;;  %v275_v15 = vsub.f32 %v263_v50, %v1967_v58 }
  0x29   :  { %v322_v19 = vmul.f32 %v1893_v4, %v146_v55  ;;  %v459_v20 = vmul.f32 0.299, %v142_v63  ;;  %v463_v21 = vmul.f32 0.587, %v144_v54  ;;  %v471_v22 = vmul.f32 0.114, %v146_v55 }
  0x2a   :  { %605 = vrot.lane.b32.xlu2 %v496_v61, %s1808_s5  ;;  %v174_v24 = vmul.f32 %v1891_v3, %v142_v63  ;;  %v283_v25 = vand.u32 2147483647, %v271_v62  ;;  %v380_v26 = vsub.f32 %v144_v54, %v1887_v1  ;;  %v188_v27 = vsub.f32 %v176_v5, %v1907_v12  ;;  %v143_v54 = vld [vmem:[#allocation9 + $0x8] sm:$0xff] }
  0x2b   :  { %v190_v29 = vsub.f32 %v178_v8, %v1909_v13  ;;  %v467_v34 = vadd.f32 %v463_v21, %v459_v20  ;;  %v318_v36 = vmul.f32 %v1893_v4, %v142_v63  ;;  %v332_v37 = vsub.f32 %v320_v9, %v1914_v17  ;;  %v147_v9 = vld [vmem:[#allocation9 + $0x28] sm:$0xff] }
  0x2c   :  { %v186_v35 = vsub.f32 %v174_v24, %v1905_v11  ;;  %v285_v40 = vand.u32 2147483647, %v273_v7  ;;  %v382_v41 = vsub.f32 %v146_v55, %v1889_v2  ;;  %v200_v42 = vand.u32 2147483647, %v188_v27 }
  0x2d   :  { %v334_v44 = vsub.f32 %v322_v19, %v1916_v18  ;;  %v475_v45 = vadd.f32 %v471_v22, %v467_v34  ;;  %v202_v1 = vand.u32 2147483647, %v190_v29  ;;  %v330_v12 = vsub.f32 %v318_v36, %v1912_v16 }
  0x2e   :  { %v198_v46 = vand.u32 2147483647, %v186_v35  ;;  %v1993_v49 = vand.u32 2147483647, %v225_v6  ;;  %v287_v13 = vand.u32 2147483647, %v275_v15  ;;  %v248_v11 = vadd.f32 %v1937_v32, %v200_v42 }
  0x2f   :  { %v344_v50 = vand.u32 2147483647, %v332_v37  ;;  %v392_v51 = vand.u32 2147483647, %v380_v26  ;;  %582 = vrot.lane.b32.xlu0 %v475_v45, %s1808_s5  ;;  %v342_v53 = vand.u32 2147483647, %v330_v12  ;;  %v378_v2 = vsub.f32 %v142_v63, %v1885_v0 }
  0x30   :  { %v246_v17 = vadd.f32 %v234_v43, %v198_v46  ;;  %v1998_v18 = vand.u32 2147483647, %v227_v10  ;;  %v394_v55 = vand.u32 2147483647, %v382_v41  ;;  %v250_v61 = vadd.f32 %v1946_v39, %v202_v1  ;;  %v145_v6 = vld [vmem:[#allocation9 + $0x18] sm:$0xff] }
  0x31   :  { %v346_v16 = vand.u32 2147483647, %v334_v44  ;;  %v295_v62 = vmul.f32 0.001, %v283_v25  ;;  %v2001_v5 = vmul.f32 0.001, %v285_v40  ;;  %v308_v7 = vadd.f32 %v296_v57, %v248_v11 }
  0x32   :  { %v2003_v32 = vmul.f32 0.001, %v287_v13  ;;  %v356_v8 = vmul.f32 0.001, %v344_v50  ;;  %v175_v43 = vmul.f32 %v1934_v31, %v143_v54  ;;  %v404_v15 = vmul.f32 0.01, %v392_v51 }
  0x33   :  { %v306_v0 = vadd.f32 %v294_v56, %v246_v17  ;;  %v354_v63 = vmul.f32 0.001, %v342_v53  ;;  %v390_v10 = vand.u32 2147483647, %v378_v2  ;;  %v406_v19 = vmul.f32 0.01, %v394_v55 }
  0x34   :  { %v310_v20 = vadd.f32 %v298_v60, %v250_v61  ;;  %v358_v21 = vmul.f32 0.001, %v346_v16  ;;  %v177_v39 = vmul.f32 %v1934_v31, %v145_v6  ;;  %v179_v22 = vmul.f32 %v1934_v31, %v147_v9  ;;  %v2020_v50 = vld [vmem:[#allocation9 + $0x30] sm:$0xff] }
  0x35   :  { %v319_v24 = vmul.f32 %v1929_v28, %v143_v54  ;;  %v460_v25 = vmul.f32 0.299, %v143_v54  ;;  %v464_v57 = vmul.f32 0.587, %v145_v6  ;;  %v368_v26 = vadd.f32 %v356_v8, %v308_v7  ;;  %v2030_v17 = vld [vmem:[#allocation12 + $0x10] sm:$0xff]  ;;  %v2037_v8 = vld [vmem:[#allocation4 + $0x38] sm:$0xff] }
  0x36   :  { %v321_v27 = vmul.f32 %v1929_v28, %v145_v6  ;;  %v323_v29 = vmul.f32 %v1929_v28, %v147_v9  ;;  %v187_v56 = vsub.f32 %v175_v43, %v1956_v47  ;;  %v366_v34 = vadd.f32 %v354_v63, %v306_v0  ;;  %2914 = vst [vmem:[#allocation25_spill] sm:$0xff] %v2030_v17  ;;  %v2035_v7 = vld [vmem:[#allocation4 + $0x30] sm:$0xff]  ;;  %v2041_v43 = vld [vmem:[#allocation4 + $0x40] sm:$0xff]  ;;  %v2045_v0 = vld [vmem:[#allocation9 + $0x58] sm:$0xff] }
  0x37   :  { %v402_v35 = vmul.f32 0.01, %v390_v10  ;;  %v468_v60 = vadd.f32 %v464_v57, %v460_v25  ;;  %v472_v36 = vmul.f32 0.114, %v147_v9  ;;  %v379_v37 = vsub.f32 %v143_v54, %v1924_v23  ;;  %v2022_v23 = vld [vmem:[#allocation9 + $0x38] sm:$0xff] }
  0x38   :  { %v381_v40 = vsub.f32 %v145_v6, %v1932_v30  ;;  %v383_v41 = vsub.f32 %v147_v9, %v1939_v33  ;;  %v189_v42 = vsub.f32 %v177_v39, %v1958_v48  ;;  %v191_v45 = vsub.f32 %v179_v22, %v1967_v58  ;;  %v2024_v30 = vld [vmem:[#allocation9 + $0x40] sm:$0xff]  ;;  %v2059_v39 = vld [vmem:[#allocation10 + $0x38] sm:$0xff]  ;;  %v2061_v22 = vld [vmem:[#allocation13 + $0x10] sm:$0xff] }
  0x39   :  { %v476_v44 = vadd.f32 %v472_v36, %v468_v60  ;;  %v199_v46 = vand.u32 2147483647, %v187_v56  ;;  %v331_v1 = vsub.f32 %v319_v24, %v1944_v38  ;;  %v370_v12 = vadd.f32 %v358_v21, %v310_v20  ;;  %v2028_v38 = vld [vmem:[#allocation9 + $0x48] sm:$0xff]  ;;  %v2057_v21 = vld [vmem:[#allocation10 + $0x30] sm:$0xff] }
  0x3a   :  { %v201_v47 = vand.u32 2147483647, %v189_v42  ;;  %v333_v13 = vsub.f32 %v321_v27, %v1964_v52  ;;  %v335_v11 = vsub.f32 %v323_v29, %v1969_v59  ;;  %v414_v33 = vadd.f32 %v402_v35, %v366_v34  ;;  %v2032_v52 = vld [vmem:[#allocation12 + $0x18] sm:$0xff]  ;;  %v2055_v20 = vld [vmem:[#allocation4 + $0x48] sm:$0xff]  ;;  %v2077_v35 = vld [vmem:[#allocation10 + $0x40] sm:$0xff] }
  0x3b   :  { %v416_v48 = vadd.f32 %v404_v15, %v368_v26  ;;  %584 = vrot.lane.b32.xlu0 %v476_v44, %s1808_s5  ;;  %v247_v58 = vadd.f32 %v1979_v14, %v199_v46  ;;  %v343_v51 = vand.u32 2147483647, %v331_v1  ;;  %v391_v59 = vand.u32 2147483647, %v379_v37  ;;  %v2043_v15 = vld [vmem:[#allocation9 + $0x50] sm:$0xff]  ;;  %v2068_v27 = vld [vmem:[#allocation13 + $0x18] sm:$0xff] }
  0x3c   :  { %v393_v53 = vand.u32 2147483647, %v381_v40  ;;  %v249_v2 = vadd.f32 %v1993_v49, %v201_v47  ;;  %v345_v54 = vand.u32 2147483647, %v333_v13  ;;  %v395_v55 = vand.u32 2147483647, %v383_v41 }
  0x3d   :  { %v203_v61 = vand.u32 2147483647, %v191_v45  ;;  %v307_v16 = vadd.f32 %v295_v62, %v247_v58  ;;  %v355_v6 = vmul.f32 0.001, %v343_v51  ;;  %v2039_v14 = vadd.f32 %v406_v19, %v370_v12  ;;  %v2079_v60 = vld [vmem:[#allocation10 + $0x48] sm:$0xff]  ;;  %v2081_v36 = vld [vmem:[#allocation10 + $0x50] sm:$0xff] }
  0x3e   :  { %v347_v9 = vand.u32 2147483647, %v335_v11  ;;  %v180_v49 = vmul.f32 %v2030_v17, %v2020_v50  ;;  %v181_v62 = vmul.f32 %v2032_v52, %v2022_v23  ;;  %v2052_v63 = vsel %vm426_vm0, %v416_v48, 0.0  ;;  %v2087_v41 = vld [vmem:[#allocation4 + $0x50] sm:$0xff]  ;;  %v2091_v44 = vld [vmem:[#allocation10 + $0x58] sm:$0xff]  ;;  %v2101_v13 = vld [vmem:[#allocation7 + $0x40] sm:$0xff] }
  0x3f   :  { %2915 = vst [vmem:[#allocation26_spill] sm:$0xff] %v2039_v14  ;;  %v309_v10 = vadd.f32 %v2001_v5, %v249_v2  ;;  %v357_v19 = vmul.f32 0.001, %v345_v54  ;;  %v182_v24 = vmul.f32 %v2030_v17, %v2024_v30  ;;  %v2066_v25 = vsel %vm426_vm0, %v414_v33, 0.0  ;;  %v2089_v42 = vld [vmem:[#allocation7 + $0x30] sm:$0xff]  ;;  %v2097_v12 = vld [vmem:[#allocation4 + $0x58] sm:$0xff] }
  0x40   :  { %v403_v57 = vmul.f32 0.01, %v391_v59  ;;  %v405_v26 = vmul.f32 0.01, %v393_v53  ;;  %v183_v5 = vmul.f32 %v2032_v52, %v2028_v38  ;;  %v2072_v29 = vmul.f32 0.01, %v395_v55 }
  0x41   :  { %v2075_v56 = vadd.f32 %v1998_v18, %v203_v61  ;;  %v367_v34 = vadd.f32 %v355_v6, %v307_v16  ;;  %v184_v37 = vmul.f32 %v2030_v17, %v2043_v15  ;;  %v2085_v40 = vmul.f32 0.001, %v347_v9  ;;  %v2099_v47 = vld [vmem:[#allocation7 + $0x38] sm:$0xff]  ;;  %v2108_v58 = vld [vmem:[#allocation7 + $0x48] sm:$0xff]  ;;  %v2117_v55 = vld [vmem:[#allocation7 + $0x50] sm:$0xff] }
  0x42   :  { %v185_v18 = vmul.f32 %v2032_v52, %v2045_v0  ;;  %v192_v45 = vsub.f32 %v180_v49, %v2035_v7  ;;  %v193_v46 = vsub.f32 %v181_v62, %v2037_v8  ;;  %v369_v1 = vadd.f32 %v357_v19, %v309_v10  ;;  %v2123_v9 = vld [vmem:[#allocation7 + $0x58] sm:$0xff] }
  0x43   :  { %v194_v11 = vsub.f32 %v182_v24, %v2041_v43  ;;  %v216_v33 = vmul.f32 %v2061_v22, %v2057_v21  ;;  %v217_v48 = vmul.f32 %v2068_v27, %v2059_v39  ;;  %v195_v51 = vsub.f32 %v183_v5, %v2055_v20 }
  0x44   :  { %v218_v59 = vmul.f32 %v2061_v22, %v2077_v35  ;;  %v219_v53 = vmul.f32 %v2068_v27, %v2079_v60  ;;  %v220_v2 = vmul.f32 %v2061_v22, %v2081_v36  ;;  %v415_v54 = vadd.f32 %v403_v57, %v367_v34 }
  0x45   :  { %v196_v61 = vsub.f32 %v184_v37, %v2087_v41  ;;  %v221_v16 = vmul.f32 %v2068_v27, %v2091_v44  ;;  %v228_v6 = vsub.f32 %v216_v33, %v2089_v42  ;;  %v197_v49 = vsub.f32 %v185_v18, %v2097_v12 }
  0x46   :  { %v229_v62 = vsub.f32 %v217_v48, %v2099_v47  ;;  %v230_v10 = vsub.f32 %v218_v59, %v2101_v13  ;;  %v264_v19 = vmul.f32 %v2030_v17, %v2057_v21  ;;  %v2130_v24 = vadd.f32 %v405_v26, %v369_v1 }
  0x47   :  { %v204_v57 = vand.u32 2147483647, %v192_v45  ;;  %v205_v5 = vand.u32 2147483647, %v193_v46  ;;  %v231_v34 = vsub.f32 %v219_v53, %v2108_v58  ;;  %v206_v37 = vand.u32 2147483647, %v194_v11 }
  0x48   :  { %2916 = vst [vmem:[#allocation27_spill] sm:$0xff] %v2130_v24  ;;  %v232_v33 = vsub.f32 %v220_v2, %v2117_v55  ;;  %v265_v28 = vmul.f32 %v2032_v52, %v2059_v39  ;;  %v266_v18 = vmul.f32 %v2030_v17, %v2077_v35  ;;  %v233_v48 = vsub.f32 %v221_v16, %v2123_v9 }
  0x49   :  { %v240_v59 = vand.u32 2147483647, %v228_v6  ;;  %v267_v26 = vmul.f32 %v2032_v52, %v2079_v60  ;;  %v268_v45 = vmul.f32 %v2030_v17, %v2081_v36  ;;  %v207_v46 = vand.u32 2147483647, %v195_v51 }
  0x4a   :  { %v241_v1 = vand.u32 2147483647, %v229_v62  ;;  %v242_v11 = vand.u32 2147483647, %v230_v10  ;;  %v276_v53 = vsub.f32 %v264_v19, %v2035_v7  ;;  %v2145_v2 = vsel %vm426_vm0, %v415_v54, 0.0 }
  0x4b   :  { %v208_v4 = vand.u32 2147483647, %v196_v61  ;;  %v243_v31 = vand.u32 2147483647, %v231_v34  ;;  %v269_v16 = vmul.f32 %v2032_v52, %v2091_v44  ;;  %v209_v6 = vand.u32 2147483647, %v197_v49 }
  0x4c   :  { %v244_v3 = vand.u32 2147483647, %v232_v33  ;;  %v277_v14 = vsub.f32 %v265_v28, %v2037_v8  ;;  %v278_v24 = vsub.f32 %v266_v18, %v2041_v43  ;;  %v245_v17 = vand.u32 2147483647, %v233_v48 }
  0x4d   :  { %v252_v51 = vadd.f32 %v240_v59, %v204_v57  ;;  %v279_v62 = vsub.f32 %v267_v26, %v2055_v20  ;;  %v280_v7 = vsub.f32 %v268_v45, %v2087_v41  ;;  %v253_v10 = vadd.f32 %v241_v1, %v205_v5 }
  0x4e   :  { %v254_v54 = vadd.f32 %v242_v11, %v206_v37  ;;  %v288_v19 = vand.u32 2147483647, %v276_v53  ;;  %v324_v61 = vmul.f32 %v2061_v22, %v2020_v50  ;;  %v255_v34 = vadd.f32 %v243_v31, %v207_v46 }
  0x4f   :  { %v281_v49 = vsub.f32 %v269_v16, %v2097_v12  ;;  %v325_v28 = vmul.f32 %v2068_v27, %v2022_v23  ;;  %v326_v8 = vmul.f32 %v2061_v22, %v2024_v30  ;;  %v256_v43 = vadd.f32 %v244_v3, %v208_v4 }
  0x50   :  { %v289_v57 = vand.u32 2147483647, %v277_v14  ;;  %v290_v20 = vand.u32 2147483647, %v278_v24  ;;  %v327_v41 = vmul.f32 %v2068_v27, %v2028_v38  ;;  %v257_v5 = vadd.f32 %v245_v17, %v209_v6 }
  0x51   :  { %v291_v37 = vand.u32 2147483647, %v279_v62  ;;  %v292_v33 = vand.u32 2147483647, %v280_v7  ;;  %v328_v31 = vmul.f32 %v2061_v22, %v2043_v15  ;;  %v300_v18 = vmul.f32 0.001, %v288_v19 }
  0x52   :  { %v311_v12 = vadd.f32 %v2003_v32, %v2075_v56  ;;  %v329_v48 = vmul.f32 %v2068_v27, %v2045_v0  ;;  %v336_v3 = vsub.f32 %v324_v61, %v2089_v42  ;;  %v293_v4 = vand.u32 2147483647, %v281_v49 }
  0x53   :  { %v337_v14 = vsub.f32 %v325_v28, %v2099_v47  ;;  %v338_v24 = vsub.f32 %v326_v8, %v2101_v13  ;;  %v339_v17 = vsub.f32 %v327_v41, %v2108_v58  ;;  %v301_v59 = vmul.f32 0.001, %v289_v57 }
  0x54   :  { %v302_v26 = vmul.f32 0.001, %v290_v20  ;;  %v340_v45 = vsub.f32 %v328_v31, %v2117_v55  ;;  %v348_v46 = vand.u32 2147483647, %v336_v3  ;;  %v303_v1 = vmul.f32 0.001, %v291_v37 }
  0x55   :  { %v304_v11 = vmul.f32 0.001, %v292_v33  ;;  %v341_v32 = vsub.f32 %v329_v48, %v2123_v9  ;;  %v349_v56 = vand.u32 2147483647, %v337_v14  ;;  %v312_v53 = vadd.f32 %v300_v18, %v252_v51 }
  0x56   :  { %v360_v16 = vmul.f32 0.001, %v348_v46  ;;  %v384_v42 = vsub.f32 %v2020_v50, %v2057_v21  ;;  %v385_v47 = vsub.f32 %v2022_v23, %v2059_v39  ;;  %v305_v13 = vmul.f32 0.001, %v293_v4  ;;  %v2917_v46 = vld [vmem:[#allocation27_spill] sm:$0xff] }
  0x57   :  { %v350_v58 = vand.u32 2147483647, %v338_v24  ;;  %v351_v6 = vand.u32 2147483647, %v339_v17  ;;  %v386_v55 = vsub.f32 %v2024_v30, %v2077_v35  ;;  %v313_v62 = vadd.f32 %v301_v59, %v253_v10 }
  0x58   :  { %v314_v7 = vadd.f32 %v302_v26, %v254_v54  ;;  %v352_v19 = vand.u32 2147483647, %v340_v45  ;;  %v361_v61 = vmul.f32 0.001, %v349_v56  ;;  %v315_v9 = vadd.f32 %v303_v1, %v255_v34 }
  0x59   :  { %v353_v49 = vand.u32 2147483647, %v341_v32  ;;  %v371_v51 = vadd.f32 %v2085_v40, %v311_v12  ;;  %v387_v28 = vsub.f32 %v2028_v38, %v2079_v60  ;;  %v372_v8 = vadd.f32 %v360_v16, %v312_v53  ;;  %v2918_v32 = vld [vmem:[#allocation26_spill] sm:$0xff] }
  0x5a   :  { %v388_v57 = vsub.f32 %v2043_v15, %v2081_v36  ;;  %v396_v20 = vand.u32 2147483647, %v384_v42  ;;  %v397_v41 = vand.u32 2147483647, %v385_v47  ;;  %v316_v37 = vadd.f32 %v304_v11, %v256_v43 }
  0x5b   :  { %v362_v33 = vmul.f32 0.001, %v350_v58  ;;  %v363_v31 = vmul.f32 0.001, %v351_v6  ;;  %v398_v10 = vand.u32 2147483647, %v386_v55  ;;  %v373_v18 = vadd.f32 %v361_v61, %v313_v62 }
  0x5c   :  { %v364_v54 = vmul.f32 0.001, %v352_v19  ;;  %v408_v48 = vmul.f32 0.01, %v396_v20  ;;  %v429_v34 = vadd.f32 %v2145_v2, %v2066_v25  ;;  %v389_v40 = vsub.f32 %v2045_v0, %v2091_v44 }
  0x5d   :  { %v399_v12 = vand.u32 2147483647, %v387_v28  ;;  %v409_v3 = vmul.f32 0.01, %v397_v41  ;;  %v419_v4 = vadd.f32 %v2072_v29, %v371_v51  ;;  %v317_v14 = vadd.f32 %v305_v13, %v257_v5 }
  0x5e   :  { %v400_v24 = vand.u32 2147483647, %v388_v57  ;;  %v420_v17 = vadd.f32 %v408_v48, %v372_v8  ;;  %v431_v43 = vadd.f32 %v2052_v63, %v429_v34  ;;  %v365_v59 = vmul.f32 0.001, %v353_v49 }
  0x5f   :  { %v374_v26 = vadd.f32 %v362_v33, %v314_v7  ;;  %v410_v45 = vmul.f32 0.01, %v398_v10  ;;  %v432_v1 = vsel %vm426_vm0, %v2917_v46, 0.0  ;;  %v375_v11 = vadd.f32 %v363_v31, %v315_v9 }
  0x60   :  { %v376_v25 = vadd.f32 %v364_v54, %v316_v37  ;;  %v433_v2 = vadd.f32 %v432_v1, %v431_v43  ;;  %v434_v56 = vsel %vm426_vm0, %v2918_v32, 0.0  ;;  %v401_v53 = vand.u32 2147483647, %v389_v40  ;;  %v2923_v43 = vld [vmem:[#allocation23_spill] sm:$0xff] }
  0x61   :  { %v411_v16 = vmul.f32 0.01, %v399_v12  ;;  %v421_v29 = vadd.f32 %v409_v3, %v373_v18  ;;  %v436_v5 = vsel %vm426_vm0, %v419_v4, 0.0  ;;  %v412_v42 = vmul.f32 0.01, %v400_v24  ;;  %v2919_v4 = vld [vmem:[#allocation21_spill] sm:$0xff] }
  0x62   :  { %v435_v47 = vadd.f32 %v434_v56, %v433_v2  ;;  %v438_v63 = vsel %vm426_vm0, %v420_v17, 0.0  ;;  %v481_v13 = vmul.f32 0.299, %v2057_v21  ;;  %v422_v58 = vadd.f32 %v410_v45, %v374_v26  ;;  %v2920_v24 = vld [vmem:[#allocation25_spill] sm:$0xff] }
  0x63   :  { %v485_v6 = vmul.f32 0.587, %v2077_v35  ;;  %v493_v55 = vmul.f32 0.114, %v2081_v36  ;;  %v461_v62 = vmul.f32 0.299, %v2020_v50  ;;  %v377_v7 = vadd.f32 %v365_v59, %v317_v14 }
  0x64   :  { %v437_v19 = vadd.f32 %v436_v5, %v435_v47  ;;  %v465_v61 = vmul.f32 0.587, %v2024_v30  ;;  %v473_v9 = vmul.f32 0.114, %v2043_v15  ;;  %v413_v49 = vmul.f32 0.01, %v401_v53 }
  0x65   :  { %v423_v51 = vadd.f32 %v411_v16, %v375_v11  ;;  %v440_v28 = vsel %vm426_vm0, %v421_v29, 0.0  ;;  %v489_v8 = vadd.f32 %v485_v6, %v481_v13  ;;  %v462_v20 = vmul.f32 0.299, %v2022_v23 }
  0x66   :  { %v439_v57 = vadd.f32 %v438_v63, %v437_v19  ;;  %v469_v21 = vadd.f32 %v465_v61, %v461_v62  ;;  %v466_v35 = vmul.f32 0.587, %v2028_v38  ;;  %v424_v36 = vadd.f32 %v412_v42, %v376_v25 }
  0x67   :  { %v442_v50 = vsel %vm426_vm0, %v422_v58, 0.0  ;;  %v497_v41 = vadd.f32 %v493_v55, %v489_v8  ;;  %v425_v30 = vadd.f32 %v413_v49, %v377_v7  ;;  %v444_v15 = vsel %vm426_vm0, %v423_v51, 0.0 }
  0x68   :  { %v441_v37 = vadd.f32 %v440_v28, %v439_v57  ;;  %v477_v33 = vadd.f32 %v473_v9, %v469_v21  ;;  %v474_v31 = vmul.f32 0.114, %v2045_v0  ;;  %v470_v54 = vadd.f32 %v466_v35, %v462_v20 }
  0x69   :  { %607 = vrot.lane.b32.xlu0 %v497_v41, %s1808_s5  ;;  %v446_v23 = vsel %vm426_vm0, %v424_v36, 0.0  ;;  %v1809_v38 = vmov 0.0   ;;  %v448_v48 = vsel %vm426_vm0, %v425_v30, 0.0  ;;  %v482_v40 = vmul.f32 0.299, %v2059_v39 }
  0x6a   :  { %v443_v10 = vadd.f32 %v442_v50, %v441_v37  ;;  %586 = vrot.lane.b32.xlu1 %v477_v33, %s1808_s5  ;;  %623 = vst.msk [vmem:[#allocation3 + $0x30] sm:$0x3] %vm620_vm1, %v1809_v38  ;;  %v478_v34 = vadd.f32 %v474_v31, %v470_v54  ;;  %v486_v12 = vmul.f32 0.587, %v2079_v60  ;;  %v494_v60 = vmul.f32 0.114, %v2091_v44 }
  0x6b   :  { %621 = vst.msk [vmem:[#allocation3] sm:$0x3] %vm620_vm1, %v1809_v38  ;;  %vm594_vm2 = vcmask 146448   ;;  %vm629_vm3 = vcmask 15360   ;;  %vm643_vm4 = vcmask 162960   ;;  %vm632_vm5 = vcmask 11264  }
  0x6c   :  { %v445_v18 = vadd.f32 %v444_v15, %v443_v10  ;;  %622 = vst.msk [vmem:[#allocation3 + $0x18] sm:$0x3] %vm620_vm1, %v1809_v38  ;;  %v490_v39 = vadd.f32 %v486_v12, %v482_v40  ;;  %vm646_vm6 = vcmask 158864   ;;  %vm541_vm7 = vcmask 139264  }
  0x6d   :  { %624 = vst.msk [vmem:[#allocation3 + $0x48] sm:$0x3] %vm620_vm1, %v1809_v38  ;;  %vm515_vm8 = vcmask 138248   ;;  %vm550_vm9 = vcmask 7168   ;;  %vm564_vm10 = vcmask 146568   ;;  %vm553_vm11 = vcmask 1024  }
  0x6e   :  { %v447_v0 = vadd.f32 %v446_v23, %v445_v18  ;;  %625 = vst.msk [vmem:[#allocation3 + $0x12] sm:$0x3] %vm620_vm1, %v1809_v38  ;;  %v498_v14 = vadd.f32 %v494_v60, %v490_v39  ;;  %vm567_vm12 = vcmask 140424   ;;  %vm909_vm13 = vcmask 1046528  }
  0x6f   :  { %626 = vst.msk [vmem:[#allocation3 + $0x2a] sm:$0x3] %vm620_vm1, %v1809_v38  ;;  %vm954_vm14 = vcmask 1045504   ;;  %vm1495_vm15 = vcmask 138240   ;;  %vm1499_vm0 = vcmask 131072  }
  0x70   :  { %v449_v3 = vadd.f32 %v448_v48, %v447_v0  ;;  %627 = vst.msk [vmem:[#allocation3 + $0x42] sm:$0x3] %vm620_vm1, %v1809_v38 }
  0x71   :  { %503 = vrot.lane.b32.xlu0 %v2919_v4, %s1810_s24  ;;  %628 = vst.msk [vmem:[#allocation3 + $0x5a] sm:$0x3] %vm620_vm1, %v1809_v38  ;;  %vm1534_vm1 = vcmask 0  }
  0x72   :  { %450 = vadd.xlane.f32.xlu2 %v449_v3  ;;  %588 = vrot.lane.b32.xlu1 %v478_v34, %s1808_s5  ;;  %542 = vst.msk [vmem:[#allocation2] sm:$0x1] %vm541_vm7, %v1809_v38 }
  0x73   :  { %543 = vst.msk [vmem:[#allocation2 + $0x18] sm:$0x1] %vm541_vm7, %v1809_v38 }
  0x74   :  { %544 = vst.msk [vmem:[#allocation2 + $0x30] sm:$0x1] %vm541_vm7, %v1809_v38 }
  0x75   :  { %545 = vst.msk [vmem:[#allocation2 + $0x48] sm:$0x1] %vm541_vm7, %v1809_v38 }
  0x76   :  { %546 = vst.msk [vmem:[#allocation2 + $0x11] sm:$0x1] %vm541_vm7, %v1809_v38 }
  0x77   :  { %547 = vst.msk [vmem:[#allocation2 + $0x29] sm:$0x1] %vm541_vm7, %v1809_v38 }
  0x78   :  { %548 = vst.msk [vmem:[#allocation2 + $0x41] sm:$0x1] %vm541_vm7, %v1809_v38 }
  0x79   :  { %507 = vrot.lane.b32.xlu0 %v2920_v24, %s1810_s24  ;;  %549 = vst.msk [vmem:[#allocation2 + $0x59] sm:$0x1] %vm541_vm7, %v1809_v38 }
  0x7a   :  { %609 = vrot.lane.b32.xlu1 %v498_v14, %s1808_s5 }
  0x7c   :  { %v604_v17 = vpop.permute.xlu2 %603 }
  0x7d   :  { %616 = vst.msk [vmem:[#allocation3 + $0x32] sm:$0xff] %vm594_vm2, %v604_v17 }
  0x7e   :  { %637 = vst.msk [vmem:[#allocation3 + $0x30] sm:$0xff] %vm629_vm3, %v1809_v38 }
  0x7f   :  { %651 = vst.msk [vmem:[#allocation3 + $0x30] sm:$0xff] %vm643_vm4, %v1809_v38 }
  0x81   :  { %528 = vrot.lane.b32.xlu0 %v2061_v22, %s1810_s24  ;;  %v2921_v22 = vld [vmem:[#allocation24_spill] sm:$0xff] }
  0x82   :  { %509 = vrot.lane.b32.xlu1 %v2032_v52, %s1810_s24  ;;  %v2922_v52 = vld [vmem:[#allocation22_spill] sm:$0xff] }
  0x84   :  { %v606_v44 = vpop.permute.xlu2 %605 }
  0x85   :  { %617 = vst.msk [vmem:[#allocation3 + $0x3a] sm:$0xff] %vm594_vm2, %v606_v44 }
  0x86   :  { %638 = vst.msk [vmem:[#allocation3 + $0x38] sm:$0xff] %vm629_vm3, %v1809_v38 }
  0x87   :  { %639 = vst.msk [vmem:[#allocation3 + $0x40] sm:$0xf] %vm632_vm5, %v1809_v38 }
  0x88   :  { %652 = vst.msk [vmem:[#allocation3 + $0x38] sm:$0xff] %vm643_vm4, %v1809_v38 }
  0x89   :  { %653 = vst.msk [vmem:[#allocation3 + $0x40] sm:$0xf] %vm646_vm6, %v1809_v38 }
  0x8a   :  { %505 = vrot.lane.b32.xlu2 %v2921_v22, %s1810_s24  ;;  %524 = vrot.lane.b32.xlu1 %v2922_v52, %s1810_s24 }
  0x8f   :  { %v2338_v13 = vld [vmem:[#allocation3 + $0x31] sm:$0xff] }
  0x90   :  { %v2350_v55 = vld [vmem:[#allocation3 + $0x41] sm:$0x7]  ;;  %v2388_v31 = vld [vmem:[#allocation3 + $0x39] sm:$0xff] }
  0x92   :  { %530 = vrot.lane.b32.xlu1 %v2068_v27, %s1810_s24  ;;  %526 = vrot.lane.b32.xlu2 %v2923_v43, %s1810_s24 }
  0xa1   :  { %v583_v59 = vpop.permute.xlu0 %582 }
  0xa2   :  { %595 = vst.msk [vmem:[#allocation3 + $0x2] sm:$0xff] %vm594_vm2, %v583_v59 }
  0xa3   :  { %630 = vst.msk [vmem:[#allocation3] sm:$0xff] %vm629_vm3, %v1809_v38 }
  0xa4   :  { %644 = vst.msk [vmem:[#allocation3] sm:$0xff] %vm643_vm4, %v1809_v38 }
  0xab   :  { %v861_v9 = vld [vmem:[#allocation3] sm:$0xff] }
  0xad   :  { %v585_v26 = vpop.permute.xlu0 %584 }
  0xae   :  { %596 = vst.msk [vmem:[#allocation3 + $0xa] sm:$0xff] %vm594_vm2, %v585_v26 }
  0xaf   :  { %631 = vst.msk [vmem:[#allocation3 + $0x8] sm:$0xff] %vm629_vm3, %v1809_v38 }
  0xb0   :  { %633 = vst.msk [vmem:[#allocation3 + $0x10] sm:$0xf] %vm632_vm5, %v1809_v38 }
  0xb1   :  { %645 = vst.msk [vmem:[#allocation3 + $0x8] sm:$0xff] %vm643_vm4, %v1809_v38 }
  0xb2   :  { %647 = vst.msk [vmem:[#allocation3 + $0x10] sm:$0xf] %vm646_vm6, %v1809_v38 }
  0xb8   :  { %v2286_v27 = vld [vmem:[#allocation3 + $0x1] sm:$0xff] }
  0xb9   :  { %801 = vrot.lane.b32.xlu1 %v2286_v27, %s1810_s24  ;;  %v2291_v1 = vld [vmem:[#allocation3 + $0x11] sm:$0x7]  ;;  %v2348_v6 = vld [vmem:[#allocation3 + $0x9] sm:$0xff]  ;;  %v873_v8 = vsub.f32 %v2286_v27, %v861_v9 }
  0xba   :  { %v862_v49 = vld [vmem:[#allocation3 + $0x8] sm:$0xff]  ;;  %v863_v0 = vld [vmem:[#allocation3 + $0x10] sm:$0x7] }
  0xbb   :  { %v874_v57 = vsub.f32 %v2348_v6, %v862_v49  ;;  %v885_v20 = vand.u32 2147483647, %v873_v8  ;;  %v875_v4 = vsub.f32 %v2291_v1, %v863_v0  ;;  %v869_v49 = vld [vmem:[#allocation3 + $0x40] sm:$0x7] }
  0xbd   :  { %v2372_v35 = vand.u32 2147483647, %v874_v57  ;;  %v1179_v37 = vrot.slane %v885_v20, 1  ;;  %v1223_v30 = vrot.slane %v885_v20, 2  ;;  %v887_v24 = vand.u32 2147483647, %v875_v4 }
  0xbf   :  { %v1180_v33 = vrot.slane %v2372_v35, 1  ;;  %v1224_v15 = vrot.slane %v2372_v35, 2 }
  0xc1   :  { %805 = vrot.lane.b32.xlu1 %v2291_v1, %s1810_s24  ;;  %v1181_v10 = vsel %vm909_vm13, %v1179_v37, %v1180_v33  ;;  %v1225_v48 = vsel %vm954_vm14, %v1223_v30, %v1224_v15 }
  0xc2   :  { %v1211_v18 = vadd.f32 %v1181_v10, %v885_v20  ;;  %v881_v20 = vsub.f32 %v2350_v55, %v869_v49 }
  0xc4   :  { %v2394_v34 = vadd.f32 %v1225_v48, %v1211_v18 }
  0xdb   :  { %v608_v45 = vpop.permute.xlu0 %607 }
  0xdc   :  { %618 = vst.msk [vmem:[#allocation3 + $0x4a] sm:$0xff] %vm594_vm2, %v608_v45  ;;  %v587_v46 = vpop.permute.xlu1 %586  ;;  %v1182_v45 = vrot.slane %v887_v24, 1 }
  0xdd   :  { %640 = vst.msk [vmem:[#allocation3 + $0x48] sm:$0xff] %vm629_vm3, %v1809_v38 }
  0xde   :  { %654 = vst.msk [vmem:[#allocation3 + $0x48] sm:$0xff] %vm643_vm4, %v1809_v38 }
  0xdf   :  { %597 = vst.msk [vmem:[#allocation3 + $0x1a] sm:$0xff] %vm594_vm2, %v587_v46 }
  0xe0   :  { %634 = vst.msk [vmem:[#allocation3 + $0x18] sm:$0xff] %vm629_vm3, %v1809_v38 }
  0xe1   :  { %648 = vst.msk [vmem:[#allocation3 + $0x18] sm:$0xff] %vm643_vm4, %v1809_v38 }
  0xe3   :  { %v504_v11 = vpop.permute.xlu0 %503 }
  0xe4   :  { %516 = vst.msk [vmem:[#allocation2 + $0x1] sm:$0xff] %vm515_vm8, %v504_v11  ;;  %v589_v25 = vpop.permute.xlu1 %588 }
  0xe5   :  { %v451_v2 = vpop.xlane.xlu2 %450  ;;  %551 = vst.msk [vmem:[#allocation2] sm:$0xff] %vm550_vm9, %v1809_v38 }
  0xe6   :  { %v452_v32 = vrot.slane %v451_v2, 4  ;;  %565 = vst.msk [vmem:[#allocation2] sm:$0xff] %vm564_vm10, %v1809_v38 }
  0xe7   :  { %598 = vst.msk [vmem:[#allocation3 + $0x22] sm:$0xff] %vm594_vm2, %v589_v25  ;;  %v867_v25 = vld [vmem:[#allocation3 + $0x30] sm:$0xff] }
  0xe8   :  { %v453_v56 = vadd.f32 %v452_v32, %v451_v2  ;;  %635 = vst.msk [vmem:[#allocation3 + $0x20] sm:$0xff] %vm629_vm3, %v1809_v38  ;;  %v864_v23 = vld [vmem:[#allocation3 + $0x18] sm:$0xff]  ;;  %v1226_v2 = vrot.slane %v887_v24, 2 }
  0xe9   :  { %636 = vst.msk [vmem:[#allocation3 + $0x28] sm:$0xf] %vm632_vm5, %v1809_v38 }
  0xea   :  { %v454_v53 = vrot.slane %v453_v56, 2  ;;  %649 = vst.msk [vmem:[#allocation3 + $0x20] sm:$0xff] %vm643_vm4, %v1809_v38 }
  0xeb   :  { %650 = vst.msk [vmem:[#allocation3 + $0x28] sm:$0xf] %vm646_vm6, %v1809_v38  ;;  %v508_v43 = vpop.permute.xlu0 %507 }
  0xec   :  { %v455_v16 = vadd.f32 %v454_v53, %v453_v56  ;;  %v610_v63 = vpop.permute.xlu1 %609  ;;  %518 = vst.msk [vmem:[#allocation2 + $0x19] sm:$0xff] %vm515_vm8, %v508_v43  ;;  %v1213_v56 = vadd.f32 %v1182_v45, %v887_v24 }
  0xed   :  { %v506_v29 = vpop.permute.xlu2 %505  ;;  %619 = vst.msk [vmem:[#allocation3 + $0x52] sm:$0xff] %vm594_vm2, %v610_v63  ;;  %v879_v63 = vsub.f32 %v2338_v13, %v867_v25 }
  0xee   :  { %517 = vst.msk [vmem:[#allocation2 + $0x9] sm:$0xff] %vm515_vm8, %v506_v29  ;;  %v456_v5 = vrot.slane %v455_v16, 1  ;;  %v2454_v8 = vadd.f32 %v1226_v2, %v1213_v56 }
  0xef   :  { %552 = vst.msk [vmem:[#allocation2 + $0x8] sm:$0xff] %vm550_vm9, %v1809_v38  ;;  %v891_v57 = vand.u32 2147483647, %v879_v63 }
  0xf0   :  { %554 = vst.msk [vmem:[#allocation2 + $0x10] sm:$0x3] %vm553_vm11, %v1809_v38  ;;  %v457_v42 = vadd.f32 %v456_v5, %v455_v16  ;;  %v868_v16 = vld [vmem:[#allocation3 + $0x38] sm:$0xff]  ;;  %v1183_v5 = vsel %vm909_vm13, %v1180_v33, %v1182_v45 }
  0xf1   :  { %566 = vst.msk [vmem:[#allocation2 + $0x8] sm:$0xff] %vm564_vm10, %v1809_v38  ;;  %v2359_v61 = vld [vmem:[#allocation3 + $0x19] sm:$0xff]  ;;  %v1189_v33 = vrot.slane %v891_v57, 1  ;;  %v1233_v30 = vrot.slane %v891_v57, 2 }
  0xf2   :  { %568 = vst.msk [vmem:[#allocation2 + $0x10] sm:$0x3] %vm567_vm12, %v1809_v38  ;;  %v2327_v47 = vld [vmem:[#allocation3 + $0x21] sm:$0xff]  ;;  %v2356_v7 = vld [vmem:[#allocation3 + $0x29] sm:$0x7]  ;;  %v876_v3 = vsub.f32 %v2359_v61, %v864_v23 }
  0xf3   :  { %1556 = vpush %v457_v42  ;;  %809 = vrot.lane.b32.xlu1 %v2327_v47, %s1810_s24  ;;  %v866_v62 = vld [vmem:[#allocation3 + $0x28] sm:$0x7]  ;;  %v865_v54 = vld [vmem:[#allocation3 + $0x20] sm:$0xff]  ;;  %v1227_v42 = vsel %vm954_vm14, %v1224_v15, %v1226_v2  ;;  %v893_v15 = vand.u32 2147483647, %v881_v20 }
  0xf4   :  { %641 = vst.msk [vmem:[#allocation3 + $0x50] sm:$0xff] %vm629_vm3, %v1809_v38  ;;  %v878_v19 = vsub.f32 %v2356_v7, %v866_v62  ;;  %v877_v12 = vsub.f32 %v2327_v47, %v865_v54  ;;  %v888_v60 = vand.u32 2147483647, %v876_v3  ;;  %v510_v44 = vpop.permute.xlu1 %509  ;;  %v1212_v62 = vadd.f32 %v1183_v5, %v2372_v35  ;;  %v870_v5 = vld [vmem:[#allocation3 + $0x48] sm:$0xff] }
  0xf5   :  { %642 = vst.msk [vmem:[#allocation3 + $0x58] sm:$0xf] %vm632_vm5, %v1809_v38  ;;  %v1236_v43 = vrot.slane %v893_v15, 2 }
  0xf6   :  { %655 = vst.msk [vmem:[#allocation3 + $0x50] sm:$0xff] %vm643_vm4, %v1809_v38  ;;  %v2365_v28 = vand.u32 2147483647, %v878_v19  ;;  %v2405_v39 = vand.u32 2147483647, %v877_v12  ;;  %v1184_v52 = vrot.slane %v888_v60, 1  ;;  %v880_v19 = vsub.f32 %v2388_v31, %v868_v16 }
  0xf7   :  { %656 = vst.msk [vmem:[#allocation3 + $0x58] sm:$0xf] %vm646_vm6, %v1809_v38  ;;  %v1228_v26 = vrot.slane %v888_v60, 2  ;;  %v2452_v9 = vadd.f32 %v1227_v42, %v1212_v62  ;;  %v1192_v12 = vrot.slane %v893_v15, 1 }
  0xf8   :  { %v1187_v21 = vrot.slane %v2365_v28, 1  ;;  %v1231_v50 = vrot.slane %v2365_v28, 2  ;;  %v2396_v40 = vld [vmem:[#allocation2 + $0x1] sm:$0xff]  ;;  %v1185_v22 = vrot.slane %v2405_v39, 1  ;;  %519 = vst.msk [vmem:[#allocation2 + $0x21] sm:$0xff] %vm515_vm8, %v510_v44  ;;  %v1229_v59 = vrot.slane %v2405_v39, 2 }
  0xf9   :  { %v2342_v58 = vld [vmem:[#allocation2 + $0x9] sm:$0xff]  ;;  %681 = vrot.lane.b32.xlu2 %v2396_v40, %s1810_s24  ;;  %v2411_v17 = vld [vmem:[#allocation2 + $0x11] sm:$0x1]  ;;  %557 = vst.msk [vmem:[#allocation2 + $0x28] sm:$0x3] %vm553_vm11, %v1809_v38  ;;  %v1219_v56 = vadd.f32 %v1192_v12, %v893_v15 }
  0xfa   :  { %683 = vrot.lane.b32.xlu0 %v2342_v58, %s1810_s24  ;;  %v1216_v36 = vadd.f32 %v1187_v21, %v2365_v28  ;;  %571 = vst.msk [vmem:[#allocation2 + $0x28] sm:$0x3] %vm567_vm12, %v1809_v38  ;;  %v1186_v11 = vsel %vm909_vm13, %v1184_v52, %v1185_v22  ;;  %v1230_v53 = vsel %vm954_vm14, %v1228_v26, %v1229_v59 }
  0xfb   :  { %813 = vrot.lane.b32.xlu1 %v2338_v13, %s1810_s24  ;;  %555 = vst.msk [vmem:[#allocation2 + $0x18] sm:$0xff] %vm550_vm9, %v1809_v38  ;;  %v1214_v32 = vadd.f32 %v1186_v11, %v888_v60  ;;  %v1188_v26 = vsel %vm909_vm13, %v1185_v22, %v1187_v21  ;;  %v1232_v21 = vsel %vm954_vm14, %v1229_v59, %v1231_v50 }
  0xfc   :  { %v2382_v41 = vadd.f32 %v1231_v50, %v1216_v36  ;;  %556 = vst.msk [vmem:[#allocation2 + $0x20] sm:$0xff] %vm550_vm9, %v1809_v38  ;;  %v892_v36 = vand.u32 2147483647, %v880_v19  ;;  %v525_v37 = vpop.permute.xlu1 %524 }
  0xfd   :  { %v2407_v14 = vld [vmem:[#allocation3 + $0x49] sm:$0xff]  ;;  %569 = vst.msk [vmem:[#allocation2 + $0x18] sm:$0xff] %vm564_vm10, %v1809_v38  ;;  %v2443_v29 = vadd.f32 %v1230_v53, %v1214_v32  ;;  %v1215_v32 = vadd.f32 %v1188_v26, %v2405_v39  ;;  %v529_v53 = vpop.permute.xlu0 %528  ;;  %v2516_v39 = vadd.f32 %v1236_v43, %v1219_v56 }
  0xfe   :  { %v2361_v51 = vld [vmem:[#allocation3 + $0x51] sm:$0xff]  ;;  %v2425_v46 = vld [vmem:[#allocation3 + $0x59] sm:$0x7]  ;;  %570 = vst.msk [vmem:[#allocation2 + $0x20] sm:$0xff] %vm564_vm10, %v1809_v38  ;;  %v1190_v10 = vrot.slane %v892_v36, 1  ;;  %v1234_v54 = vrot.slane %v892_v36, 2  ;;  %v882_v50 = vsub.f32 %v2407_v14, %v870_v5 }
  0xff   :  { %537 = vst.msk [vmem:[#allocation2 + $0x31] sm:$0xff] %vm515_vm8, %v525_v37  ;;  %v871_v18 = vld [vmem:[#allocation3 + $0x50] sm:$0xff]  ;;  %v872_v48 = vld [vmem:[#allocation3 + $0x58] sm:$0x7]  ;;  %v2511_v62 = vadd.f32 %v1232_v21, %v1215_v32 }
 0x100   :  { %558 = vst.msk [vmem:[#allocation2 + $0x30] sm:$0xff] %vm550_vm9, %v1809_v38  ;;  %v1191_v23 = vsel %vm909_vm13, %v1189_v33, %v1190_v10  ;;  %v1235_v3 = vsel %vm954_vm14, %v1233_v30, %v1234_v54  ;;  %v883_v24 = vsub.f32 %v2361_v51, %v871_v18  ;;  %v884_v44 = vsub.f32 %v2425_v46, %v872_v48 }
 0x101   :  { %685 = vrot.lane.b32.xlu2 %v2411_v17, %s1810_s24  ;;  %572 = vst.msk [vmem:[#allocation2 + $0x30] sm:$0xff] %vm564_vm10, %v1809_v38  ;;  %v1217_v0 = vadd.f32 %v1191_v23, %v891_v57  ;;  %v1193_v52 = vsel %vm909_vm13, %v1190_v10, %v1192_v12  ;;  %v1237_v2 = vsel %vm954_vm14, %v1234_v54, %v1236_v43  ;;  %v894_v20 = vand.u32 2147483647, %v882_v50 }
 0x102   :  { %803 = vrot.lane.b32.xlu0 %v2348_v6, %s1810_s24  ;;  %v1218_v45 = vadd.f32 %v1193_v52, %v892_v36  ;;  %v895_v11 = vand.u32 2147483647, %v883_v24  ;;  %v896_v25 = vand.u32 2147483647, %v884_v44  ;;  %539 = vst.msk [vmem:[#allocation2 + $0x49] sm:$0xff] %vm515_vm8, %v529_v53 }
 0x103   :  { %817 = vrot.lane.b32.xlu1 %v2350_v55, %s1810_s24  ;;  %v2476_v4 = vadd.f32 %v1235_v3, %v1217_v0  ;;  %561 = vst.msk [vmem:[#allocation2 + $0x48] sm:$0xff] %vm550_vm9, %v1809_v38  ;;  %v1194_v37 = vrot.slane %v894_v20, 1  ;;  %v1238_v30 = vrot.slane %v894_v20, 2  ;;  %v2559_v24 = vld [vmem:[#allocation2 + $0x29] sm:$0x1] }
 0x104   :  { %v531_v60 = vpop.permute.xlu1 %530  ;;  %v2504_v22 = vadd.f32 %v1237_v2, %v1218_v45  ;;  %v1195_v16 = vrot.slane %v895_v11, 1  ;;  %v1197_v42 = vrot.slane %v896_v25, 1  ;;  %v1239_v63 = vrot.slane %v895_v11, 2  ;;  %575 = vst.msk [vmem:[#allocation2 + $0x48] sm:$0xff] %vm564_vm10, %v1809_v38 }
 0x105   :  { %v2461_v35 = vld [vmem:[#allocation2 + $0x19] sm:$0xff]  ;;  %540 = vst.msk [vmem:[#allocation2 + $0x51] sm:$0xff] %vm515_vm8, %v531_v60  ;;  %v1241_v28 = vrot.slane %v896_v25, 2  ;;  %v2561_v44 = vld [vmem:[#allocation2 + $0x21] sm:$0xff] }
 0x106   :  { %563 = vst.msk [vmem:[#allocation2 + $0x58] sm:$0x3] %vm553_vm11, %v1809_v38  ;;  %v1198_v19 = vsel %vm909_vm13, %v1195_v16, %v1197_v42  ;;  %v1196_v54 = vsel %vm909_vm13, %v1194_v37, %v1195_v16  ;;  %v1240_v48 = vsel %vm954_vm14, %v1238_v30, %v1239_v63  ;;  %v1222_v52 = vadd.f32 %v1197_v42, %v896_v25 }
 0x107   :  { %577 = vst.msk [vmem:[#allocation2 + $0x58] sm:$0x3] %vm567_vm12, %v1809_v38  ;;  %v1221_v49 = vadd.f32 %v1198_v19, %v895_v11  ;;  %v1242_v57 = vsel %vm954_vm14, %v1239_v63, %v1241_v28  ;;  %v1220_v23 = vadd.f32 %v1196_v54, %v894_v20  ;;  %v527_v11 = vpop.permute.xlu2 %526 }
 0x108   :  { %562 = vst.msk [vmem:[#allocation2 + $0x50] sm:$0xff] %vm550_vm9, %v1809_v38  ;;  %v2571_v45 = vadd.f32 %v1241_v28, %v1222_v52 }
 0x109   :  { %1281 = vrot.lane.b32.xlu2 %v2452_v9, %s1811_s25  ;;  %576 = vst.msk [vmem:[#allocation2 + $0x50] sm:$0xff] %vm564_vm10, %v1809_v38  ;;  %v2530_v36 = vadd.f32 %v1242_v57, %v1221_v49  ;;  %v2543_v0 = vadd.f32 %v1240_v48, %v1220_v23 }
 0x10a   :  { %807 = vrot.lane.b32.xlu0 %v2359_v61, %s1810_s24  ;;  %538 = vst.msk [vmem:[#allocation2 + $0x39] sm:$0xff] %vm515_vm8, %v527_v11 }
 0x10b   :  { %821 = vrot.lane.b32.xlu1 %v2361_v51, %s1810_s24  ;;  %559 = vst.msk [vmem:[#allocation2 + $0x38] sm:$0xff] %vm550_vm9, %v1809_v38 }
 0x10c   :  { %560 = vst.msk [vmem:[#allocation2 + $0x40] sm:$0x3] %vm553_vm11, %v1809_v38 }
 0x10d   :  { %573 = vst.msk [vmem:[#allocation2 + $0x38] sm:$0xff] %vm564_vm10, %v1809_v38 }
 0x10e   :  { %574 = vst.msk [vmem:[#allocation2 + $0x40] sm:$0x3] %vm567_vm12, %v1809_v38 }
 0x111   :  { %1329 = vrot.lane.b32.xlu2 %v2452_v9, %s1812_s26 }
 0x112   :  { %811 = vrot.lane.b32.xlu0 %v2356_v7, %s1810_s24 }
 0x113   :  { %1289 = vrot.lane.b32.xlu1 %v2382_v41, %s1811_s25 }
 0x119   :  { %1285 = vrot.lane.b32.xlu2 %v2443_v29, %s1811_s25 }
 0x11a   :  { %815 = vrot.lane.b32.xlu0 %v2388_v31, %s1810_s24 }
 0x11b   :  { %1279 = vrot.lane.b32.xlu1 %v2394_v34, %s1811_s25 }
 0x121   :  { %1335 = vrot.lane.b32.xlu2 %v2511_v62, %s1812_s26 }
 0x122   :  { %819 = vrot.lane.b32.xlu0 %v2407_v14, %s1810_s24 }
 0x123   :  { %1327 = vrot.lane.b32.xlu1 %v2394_v34, %s1812_s26 }
 0x124   :  { %s1557_s27 = spop %1556 }
 0x125   :  { %s1529_s28 = smul.f32 0.0006510417, %s1557_s27 }
 0x129   :  { %1291 = vrot.lane.b32.xlu2 %v2476_v4, %s1811_s25 }
 0x12a   :  { %823 = vrot.lane.b32.xlu0 %v2425_v46, %s1810_s24 }
 0x12b   :  { %1333 = vrot.lane.b32.xlu1 %v2443_v29, %s1812_s26  ;;  %v2520_v59 = vpop.permute.xlu1 %801 }
 0x12c   :  { %v837_v38 = vsub.f32 %v2286_v27, %v2520_v59 }
 0x12e   :  { %v849_v37 = vand.u32 2147483647, %v837_v38 }
 0x130   :  { %v910_v54 = vrot.slane %v849_v37, 1  ;;  %v955_v52 = vrot.slane %v849_v37, 2 }
 0x131   :  { %1297 = vrot.lane.b32.xlu2 %v2543_v0, %s1811_s25 }
 0x132   :  { %1283 = vrot.lane.b32.xlu0 %v2454_v8, %s1811_s25 }
 0x133   :  { %687 = vrot.lane.b32.xlu1 %v2461_v35, %s1810_s24  ;;  %v806_v33 = vpop.permute.xlu1 %805 }
 0x134   :  { %v839_v15 = vsub.f32 %v2291_v1, %v806_v33 }
 0x136   :  { %v851_v10 = vand.u32 2147483647, %v839_v15 }
 0x138   :  { %v913_v18 = vrot.slane %v851_v10, 1  ;;  %v958_v3 = vrot.slane %v851_v10, 2 }
 0x139   :  { %1345 = vrot.lane.b32.xlu2 %v2543_v0, %s1812_s26 }
 0x13a   :  { %1331 = vrot.lane.b32.xlu0 %v2454_v8, %s1812_s26  ;;  %v944_v12 = vadd.f32 %v913_v18, %v851_v10 }
 0x13b   :  { %1339 = vrot.lane.b32.xlu1 %v2476_v4, %s1812_s26 }
 0x13c   :  { %v2549_v1 = vadd.f32 %v958_v3, %v944_v12 }
 0x141   :  { %691 = vrot.lane.b32.xlu2 %v2559_v24, %s1810_s24 }
 0x142   :  { %1337 = vrot.lane.b32.xlu0 %v2382_v41, %s1812_s26 }
 0x143   :  { %1341 = vrot.lane.b32.xlu1 %v2504_v22, %s1812_s26 }
 0x14a   :  { %1295 = vrot.lane.b32.xlu0 %v2516_v39, %s1811_s25 }
 0x14b   :  { %1299 = vrot.lane.b32.xlu1 %v2530_v36, %s1811_s25 }
 0x152   :  { %1287 = vrot.lane.b32.xlu0 %v2511_v62, %s1811_s25 }
 0x153   :  { %1347 = vrot.lane.b32.xlu1 %v2530_v36, %s1812_s26  ;;  %v2585_v53 = vpop.permute.xlu2 %681 }
 0x15a   :  { %1293 = vrot.lane.b32.xlu0 %v2504_v22, %s1811_s25 }
 0x15b   :  { %1063 = vrot.lane.b32.xlu1 %v2549_v1, %s1812_s26  ;;  %v2597_v19 = vpop.permute.xlu2 %685 }
 0x162   :  { %1343 = vrot.lane.b32.xlu0 %v2516_v39, %s1812_s26 }
 0x163   :  { %v1282_v23 = vpop.permute.xlu2 %1281 }
 0x165   :  { %v2557_v60 = vpop.permute.xlu1 %809 }
 0x16a   :  { %689 = vrot.lane.b32.xlu0 %v2561_v44, %s1810_s24 }
 0x16c   :  { %v2567_v43 = vpop.permute.xlu0 %683 }
 0x16d   :  { %v2569_v26 = vpop.permute.xlu1 %813 }
 0x172   :  { %1301 = vrot.lane.b32.xlu0 %v2571_v45, %s1811_s25 }
 0x174   :  { %v804_v2 = vpop.permute.xlu0 %803 }
 0x175   :  { %v838_v25 = vsub.f32 %v2348_v6, %v804_v2  ;;  %v818_v32 = vpop.permute.xlu1 %817 }
 0x176   :  { %v845_v49 = vsub.f32 %v2350_v55, %v818_v32  ;;  %v1330_v32 = vpop.permute.xlu2 %1329 }
 0x177   :  { %v850_v56 = vand.u32 2147483647, %v838_v25  ;;  %v1316_v25 = vadd.f32 %v1282_v23, %v2452_v9 }
 0x178   :  { %v2605_v15 = vand.u32 2147483647, %v845_v49 }
 0x179   :  { %v911_v21 = vrot.slane %v850_v56, 1  ;;  %v956_v16 = vrot.slane %v850_v56, 2  ;;  %v2639_v49 = vadd.f32 %v1330_v32, %v1316_v25 }
 0x17a   :  { %1015 = vrot.lane.b32.xlu0 %v2549_v1, %s1811_s25  ;;  %v923_v59 = vrot.slane %v2605_v15, 1  ;;  %v968_v11 = vrot.slane %v2605_v15, 2 }
 0x17b   :  { %v914_v5 = vsel %vm909_vm13, %v911_v21, %v913_v18  ;;  %v959_v28 = vsel %vm954_vm14, %v956_v16, %v958_v3  ;;  %v912_v48 = vsel %vm909_vm13, %v910_v54, %v911_v21 }
 0x17c   :  { %v943_v42 = vadd.f32 %v914_v5, %v850_v56  ;;  %v808_v63 = vpop.permute.xlu0 %807  ;;  %v950_v12 = vadd.f32 %v923_v59, %v2605_v15  ;;  %v942_v2 = vadd.f32 %v912_v48, %v849_v37  ;;  %v841_v56 = vsub.f32 %v2327_v47, %v2557_v60 }
 0x17d   :  { %v2590_v6 = vpop.permute.xlu1 %821  ;;  %v840_v21 = vsub.f32 %v2359_v61, %v808_v63 }
 0x17e   :  { %v2593_v50 = vadd.f32 %v959_v28, %v943_v42  ;;  %v2632_v5 = vadd.f32 %v968_v11, %v950_v12  ;;  %v957_v28 = vsel %vm954_vm14, %v955_v52, %v956_v16  ;;  %v1286_v60 = vpop.permute.xlu2 %1285 }
 0x17f   :  { %v2637_v38 = vadd.f32 %v957_v28, %v942_v2  ;;  %v852_v9 = vand.u32 2147483647, %v840_v21  ;;  %v1318_v48 = vadd.f32 %v1286_v60, %v2443_v29 }
 0x181   :  { %v915_v16 = vrot.slane %v852_v9, 1 }
 0x184   :  { %v812_v57 = vpop.permute.xlu0 %811 }
 0x185   :  { %v842_v20 = vsub.f32 %v2356_v7, %v812_v57  ;;  %v2601_v33 = vpop.permute.xlu1 %1289  ;;  %v2641_v57 = vand.u32 2147483647, %v841_v56 }
 0x186   :  { %v2667_v2 = vpop.permute.xlu2 %1335 }
 0x187   :  { %v2603_v30 = vand.u32 2147483647, %v842_v20  ;;  %v916_v63 = vrot.slane %v2641_v57, 1  ;;  %v843_v20 = vsub.f32 %v2338_v13, %v2569_v26  ;;  %v960_v26 = vrot.slane %v852_v9, 2 }
 0x189   :  { %v918_v10 = vrot.slane %v2603_v30, 1  ;;  %v963_v55 = vrot.slane %v2603_v30, 2  ;;  %v917_v12 = vsel %vm909_vm13, %v915_v16, %v916_v63  ;;  %v855_v52 = vand.u32 2147483647, %v843_v20 }
 0x18b   :  { %v947_v27 = vadd.f32 %v918_v10, %v2603_v30  ;;  %v920_v25 = vrot.slane %v855_v52, 1  ;;  %v965_v20 = vrot.slane %v855_v52, 2 }
 0x18c   :  { %v816_v7 = vpop.permute.xlu0 %815 }
 0x18d   :  { %v2615_v18 = vadd.f32 %v963_v55, %v947_v27  ;;  %v1280_v3 = vpop.permute.xlu1 %1279  ;;  %v844_v37 = vsub.f32 %v2388_v31, %v816_v7  ;;  %v945_v7 = vadd.f32 %v917_v12, %v852_v9 }
 0x18e   :  { %v1315_v61 = vadd.f32 %v1280_v3, %v2394_v34 }
 0x18f   :  { %1069 = vrot.lane.b32.xlu1 %v2615_v18, %s1812_s26  ;;  %1021 = vrot.lane.b32.xlu2 %v2615_v18, %s1811_s25  ;;  %v856_v34 = vand.u32 2147483647, %v844_v37 }
 0x191   :  { %v921_v32 = vrot.slane %v856_v34, 1  ;;  %v966_v37 = vrot.slane %v856_v34, 2 }
 0x193   :  { %v922_v9 = vsel %vm909_vm13, %v920_v25, %v921_v32  ;;  %v919_v25 = vsel %vm909_vm13, %v916_v63, %v918_v10  ;;  %v1320_v10 = vadd.f32 %v2601_v33, %v2382_v41  ;;  %v969_v41 = vsel %vm954_vm14, %v966_v37, %v968_v11 }
 0x194   :  { %v2634_v42 = vpop.permute.xlu0 %819  ;;  %v946_v63 = vadd.f32 %v919_v25, %v2641_v57 }
 0x195   :  { %v1328_v47 = vpop.permute.xlu1 %1327  ;;  %v846_v15 = vsub.f32 %v2407_v14, %v2634_v42 }
 0x196   :  { %v2653_v27 = vadd.f32 %v1328_v47, %v1315_v61 }
 0x197   :  { %1027 = vrot.lane.b32.xlu1 %v2632_v5, %s1811_s25  ;;  %1011 = vrot.lane.b32.xlu2 %v2637_v38, %s1811_s25 }
 0x19c   :  { %v824_v54 = vpop.permute.xlu0 %823 }
 0x19d   :  { %v848_v23 = vsub.f32 %v2425_v46, %v824_v54  ;;  %v1334_v13 = vpop.permute.xlu1 %1333  ;;  %v961_v46 = vrot.slane %v2641_v57, 2 }
 0x19e   :  { %v2663_v31 = vadd.f32 %v1334_v13, %v1318_v48  ;;  %v1292_v48 = vpop.permute.xlu2 %1291 }
 0x19f   :  { %v2657_v3 = vand.u32 2147483647, %v848_v23  ;;  %1075 = vrot.lane.b32.xlu1 %v2632_v5, %s1812_s26  ;;  %1061 = vrot.lane.b32.xlu2 %v2593_v50, %s1812_s26  ;;  %v962_v61 = vsel %vm954_vm14, %v960_v26, %v961_v46  ;;  %v948_v23 = vadd.f32 %v922_v9, %v855_v52  ;;  %v967_v26 = vsel %vm954_vm14, %v965_v20, %v966_v37 }
 0x1a0   :  { %v2674_v60 = vadd.f32 %v962_v61, %v945_v7  ;;  %v964_v61 = vsel %vm954_vm14, %v961_v46, %v963_v55 }
 0x1a1   :  { %v928_v29 = vrot.slane %v2657_v3, 1  ;;  %v973_v21 = vrot.slane %v2657_v3, 2  ;;  %v2691_v7 = vadd.f32 %v967_v26, %v948_v23  ;;  %v2716_v20 = vadd.f32 %v964_v61, %v946_v63  ;;  %v2764_v63 = vld [vmem:[#allocation2 + $0x31] sm:$0xff]  ;;  %v2775_v61 = vld [vmem:[#allocation2 + $0x59] sm:$0x1] }
 0x1a3   :  { %v953_v56 = vadd.f32 %v928_v29, %v2657_v3  ;;  %v847_v3 = vsub.f32 %v2361_v51, %v2590_v6  ;;  %v1321_v51 = vadd.f32 %v1292_v48, %v2476_v4  ;;  %v858_v48 = vand.u32 2147483647, %v846_v15 }
 0x1a4   :  { %v1284_v28 = vpop.permute.xlu0 %1283 }
 0x1a5   :  { %v2671_v47 = vadd.f32 %v973_v21, %v953_v56  ;;  %v2681_v16 = vpop.permute.xlu1 %687  ;;  %v1317_v54 = vadd.f32 %v1284_v28, %v2454_v8  ;;  %v924_v8 = vsel %vm909_vm13, %v921_v32, %v923_v59  ;;  %v859_v52 = vand.u32 2147483647, %v847_v3 }
 0x1a6   :  { %v949_v59 = vadd.f32 %v924_v8, %v856_v34  ;;  %v1298_v32 = vpop.permute.xlu2 %1297  ;;  %v925_v14 = vrot.slane %v858_v48, 1  ;;  %v970_v8 = vrot.slane %v858_v48, 2 }
 0x1a7   :  { %1081 = vrot.lane.b32.xlu0 %v2671_v47, %s1812_s26  ;;  %1033 = vrot.lane.b32.xlu1 %v2671_v47, %s1811_s25  ;;  %v926_v4 = vrot.slane %v859_v52, 1  ;;  %v1324_v57 = vadd.f32 %v1298_v32, %v2543_v0  ;;  %v971_v34 = vrot.slane %v859_v52, 2 }
 0x1a8   :  { %1065 = vrot.lane.b32.xlu2 %v2674_v60, %s1812_s26  ;;  %v2721_v33 = vadd.f32 %v969_v41, %v949_v59 }
 0x1a9   :  { %v929_v30 = vsel %vm909_vm13, %v926_v4, %v928_v29  ;;  %v927_v3 = vsel %vm909_vm13, %v925_v14, %v926_v4  ;;  %v2783_v4 = vld [vmem:[#allocation2 + $0x49] sm:$0xff] }
 0x1aa   :  { %v952_v11 = vadd.f32 %v929_v30, %v859_v52  ;;  %v2759_v52 = vld [vmem:[#allocation2 + $0x41] sm:$0x1]  ;;  %v2789_v30 = vld [vmem:[#allocation2 + $0x39] sm:$0xff] }
 0x1ac   :  { %v1332_v12 = vpop.permute.xlu0 %1331 }
 0x1ad   :  { %v2688_v13 = vadd.f32 %v1332_v12, %v1317_v54  ;;  %v1340_v6 = vpop.permute.xlu1 %1339  ;;  %v974_v54 = vsel %vm954_vm14, %v971_v34, %v973_v21 }
 0x1ae   :  { %v2709_v56 = vadd.f32 %v1340_v6, %v1321_v51  ;;  %v1346_v37 = vpop.permute.xlu2 %1345  ;;  %v2736_v12 = vadd.f32 %v974_v54, %v952_v11  ;;  %v972_v6 = vsel %vm954_vm14, %v970_v8, %v971_v34 }
 0x1af   :  { %1013 = vrot.lane.b32.xlu0 %v2593_v50, %s1811_s25  ;;  %1059 = vrot.lane.b32.xlu1 %v2637_v38, %s1812_s26  ;;  %v2734_v23 = vadd.f32 %v1346_v37, %v1324_v57  ;;  %v1377_v15 = vmul.f32 0.11111111, %v2688_v13 }
 0x1b0   :  { %1071 = vrot.lane.b32.xlu2 %v2691_v7, %s1812_s26 }
 0x1b4   :  { %v1338_v28 = vpop.permute.xlu0 %1337 }
 0x1b5   :  { %v2714_v9 = vadd.f32 %v1338_v28, %v1320_v10  ;;  %v1342_v55 = vpop.permute.xlu1 %1341 }
 0x1b6   :  { %v692_v57 = vpop.permute.xlu2 %691 }
 0x1b7   :  { %1017 = vrot.lane.b32.xlu0 %v2674_v60, %s1811_s25  ;;  %1019 = vrot.lane.b32.xlu1 %v2716_v20, %s1811_s25 }
 0x1b8   :  { %1073 = vrot.lane.b32.xlu2 %v2721_v33, %s1812_s26 }
 0x1bc   :  { %v1296_v46 = vpop.permute.xlu0 %1295 }
 0x1bd   :  { %v1300_v0 = vpop.permute.xlu1 %1299  ;;  %v1323_v32 = vadd.f32 %v1296_v46, %v2516_v39  ;;  %v1389_v46 = vmul.f32 -10.0, %v1377_v15 }
 0x1be   :  { %v1325_v29 = vadd.f32 %v1300_v0, %v2530_v36  ;;  %v951_v36 = vadd.f32 %v927_v3, %v858_v48 }
 0x1bf   :  { %1067 = vrot.lane.b32.xlu0 %v2716_v20, %s1812_s26  ;;  %1025 = vrot.lane.b32.xlu1 %v2721_v33, %s1811_s25  ;;  %v1403_v48 = vmul.f32 1.442695, %v1389_v46 }
 0x1c0   :  { %1031 = vrot.lane.b32.xlu2 %v2736_v12, %s1811_s25  ;;  %v2762_v10 = vadd.f32 %v972_v6, %v951_v36 }
 0x1c1   :  { %1574 = vpow2.f32 %v1403_v48 }
 0x1c4   :  { %v1288_v42 = vpop.permute.xlu0 %1287 }
 0x1c5   :  { %v1319_v21 = vadd.f32 %v1288_v42, %v2511_v62  ;;  %v1348_v25 = vpop.permute.xlu1 %1347  ;;  %v743_v42 = vld [vmem:[#allocation2 + $0x10] sm:$0x1] }
 0x1c6   :  { %v2756_v51 = vadd.f32 %v1348_v25, %v1325_v29  ;;  %v755_v3 = vsub.f32 %v2411_v17, %v743_v42  ;;  %v719_v25 = vsub.f32 %v2411_v17, %v2597_v19  ;;  %v746_v17 = vld [vmem:[#allocation2 + $0x28] sm:$0x1]  ;;  %v722_v42 = vsub.f32 %v2559_v24, %v692_v57 }
 0x1c7   :  { %v2748_v26 = vadd.f32 %v2667_v2, %v1319_v21  ;;  %1023 = vrot.lane.b32.xlu0 %v2691_v7, %s1811_s25  ;;  %1349 = vrot.lane.b32.xlu1 %v2571_v45, %s1812_s26  ;;  %v1575_v8 = vpop.eup %1574  ;;  %v1376_v57 = vmul.f32 0.11111111, %v2639_v49 }
 0x1c8   :  { %1079 = vrot.lane.b32.xlu2 %v2736_v12, %s1812_s26  ;;  %v767_v13 = vand.u32 2147483647, %v755_v3  ;;  %v731_v36 = vand.u32 2147483647, %v719_v25 }
 0x1cc   :  { %v1294_v62 = vpop.permute.xlu0 %1293 }
 0x1cd   :  { %v1322_v2 = vadd.f32 %v1294_v62, %v2504_v22  ;;  %v1064_v34 = vpop.permute.xlu1 %1063  ;;  %v1380_v62 = vmul.f32 0.11111111, %v2714_v9  ;;  %v758_v9 = vsub.f32 %v2559_v24, %v746_v17  ;;  %v1375_v24 = vmul.f32 0.11111111, %v2653_v27  ;;  %v741_v27 = vld [vmem:[#allocation2] sm:$0xff] }
 0x1cf   :  { %1029 = vrot.lane.b32.xlu0 %v2762_v10, %s1811_s25  ;;  %697 = vrot.lane.b32.xlu1 %v2759_v52, %s1810_s24  ;;  %v2770_v59 = vadd.f32 %v1342_v55, %v1322_v2  ;;  %v2795_v55 = vld [vmem:[#allocation2 + $0x51] sm:$0xff] }
 0x1d0   :  { %693 = vrot.lane.b32.xlu2 %v2764_v63, %s1810_s24 }
 0x1d4   :  { %v1344_v28 = vpop.permute.xlu0 %1343 }
 0x1d5   :  { %v2777_v22 = vadd.f32 %v1344_v28, %v1323_v32  ;;  %v1425_v32 = vmul.f32 %v1575_v8, %v767_v13  ;;  %v1392_v28 = vmul.f32 -10.0, %v1380_v62 }
 0x1d7   :  { %1077 = vrot.lane.b32.xlu0 %v2762_v10, %s1812_s26  ;;  %703 = vrot.lane.b32.xlu1 %v2775_v61, %s1810_s24 }
 0x1d8   :  { %699 = vrot.lane.b32.xlu2 %v2783_v4, %s1810_s24 }
 0x1dc   :  { %v2787_v41 = vpop.permute.xlu0 %689 }
 0x1df   :  { %695 = vrot.lane.b32.xlu0 %v2789_v30, %s1810_s24 }
 0x1e4   :  { %v2793_v39 = vpop.permute.xlu0 %1301 }
 0x1e7   :  { %701 = vrot.lane.b32.xlu0 %v2795_v55, %s1810_s24 }
 0x1e9   :  { %v1022_v14 = vpop.permute.xlu2 %1021 }
 0x1ea   :  { %v1052_v15 = vadd.f32 %v1022_v14, %v2615_v18  ;;  %v734_v18 = vand.u32 2147483647, %v722_v42 }
 0x1ec   :  { %v1016_v11 = vpop.permute.xlu0 %1015 }
 0x1ed   :  { %v1049_v37 = vadd.f32 %v1016_v11, %v2549_v1 }
 0x1ef   :  { %v1097_v54 = vadd.f32 %v1064_v34, %v1049_v37  ;;  %v1409_v37 = vmul.f32 1.442695, %v1392_v28  ;;  %v1387_v28 = vmul.f32 -10.0, %v1375_v24  ;;  %v717_v24 = vsub.f32 %v2396_v40, %v2585_v53 }
 0x1f1   :  { %v1109_v0 = vmul.f32 0.11111111, %v1097_v54  ;;  %v1012_v1 = vpop.permute.xlu2 %1011  ;;  %v1399_v17 = vmul.f32 1.442695, %v1387_v28  ;;  %v729_v53 = vand.u32 2147483647, %v717_v24 }
 0x1f2   :  { %v1381_v24 = vmul.f32 0.11111111, %v2709_v56 }
 0x1f3   :  { %v1121_v29 = vmul.f32 -10.0, %v1109_v0 }
 0x1f5   :  { %v1135_v21 = vmul.f32 1.442695, %v1121_v29 }
 0x1f7   :  { %1576 = vpow2.f32 %v1135_v21  ;;  %v770_v21 = vand.u32 2147483647, %v758_v9 }
 0x1f8   :  { %1578 = vpow2.f32 %v1409_v37 }
 0x1f9   :  { %v1062_v19 = vpop.permute.xlu2 %1061 }
 0x1fd   :  { %v1577_v6 = vpop.eup %1576 }
 0x1fe   :  { %v1157_v2 = vmul.f32 %v1577_v6, %v731_v36  ;;  %v1579_v14 = vpop.eup %1578 }
 0x1ff   :  { %v1428_v36 = vmul.f32 %v1579_v14, %v770_v21  ;;  %v742_v14 = vld [vmem:[#allocation2 + $0x8] sm:$0xff] }
 0x200   :  { %v1437_v11 = vadd.f32 %v1425_v32, %v1157_v2 }
 0x201   :  { %v1070_v34 = vpop.permute.xlu1 %1069 }
 0x202   :  { %v1100_v46 = vadd.f32 %v1070_v34, %v1052_v15  ;;  %1463 = vrot.lane.b32.xlu1 %v1437_v11, %s1811_s25  ;;  %v1066_v25 = vpop.permute.xlu2 %1065  ;;  %v1047_v15 = vadd.f32 %v1012_v1, %v2637_v38  ;;  %v1388_v11 = vmul.f32 -10.0, %v1376_v57  ;;  %v744_v57 = vld [vmem:[#allocation2 + $0x18] sm:$0xff] }
 0x204   :  { %v1112_v54 = vmul.f32 0.11111111, %v1100_v46  ;;  %v1401_v21 = vmul.f32 1.442695, %v1388_v11 }
 0x206   :  { %v1124_v48 = vmul.f32 -10.0, %v1112_v54 }
 0x208   :  { %v1141_v0 = vmul.f32 1.442695, %v1124_v48  ;;  %v1378_v48 = vmul.f32 0.11111111, %v2663_v31  ;;  %v754_v31 = vsub.f32 %v2342_v58, %v742_v14 }
 0x209   :  { %v1028_v29 = vpop.permute.xlu1 %1027 }
 0x20a   :  { %1580 = vpow2.f32 %v1141_v0  ;;  %v2814_v32 = vpop.permute.xlu2 %1071  ;;  %v1390_v38 = vmul.f32 -10.0, %v1378_v48 }
 0x20b   :  { %1582 = vpow2.f32 %v1399_v17  ;;  %v766_v17 = vand.u32 2147483647, %v754_v31 }
 0x20c   :  { %1584 = vpow2.f32 %v1401_v21  ;;  %v1405_v28 = vmul.f32 1.442695, %v1390_v38 }
 0x210   :  { %v1581_v3 = vpop.eup %1580 }
 0x211   :  { %v1076_v13 = vpop.permute.xlu1 %1075  ;;  %v1160_v8 = vmul.f32 %v1581_v3, %v734_v18 }
 0x212   :  { %v2821_v0 = vpop.permute.xlu2 %1073 }
 0x213   :  { %v1440_v62 = vadd.f32 %v1428_v36, %v1160_v8  ;;  %v753_v8 = vsub.f32 %v2396_v40, %v741_v27  ;;  %v756_v40 = vsub.f32 %v2461_v35, %v744_v57 }
 0x215   :  { %1469 = vrot.lane.b32.xlu1 %v1440_v62, %s1811_s25 }
 0x219   :  { %v2810_v6 = vpop.permute.xlu1 %1033  ;;  %v2812_v2 = vpop.permute.xlu0 %1081 }
 0x21a   :  { %v2832_v48 = vpop.permute.xlu2 %1031 }
 0x221   :  { %v1060_v34 = vpop.permute.xlu1 %1059  ;;  %v1014_v46 = vpop.permute.xlu0 %1013 }
 0x222   :  { %v1095_v37 = vadd.f32 %v1060_v34, %v1047_v15  ;;  %v1048_v54 = vadd.f32 %v1014_v46, %v2593_v50  ;;  %v1379_v15 = vmul.f32 0.11111111, %v2748_v26  ;;  %v765_v34 = vand.u32 2147483647, %v753_v8 }
 0x223   :  { %v718_v46 = vsub.f32 %v2342_v58, %v2567_v43  ;;  %v1383_v58 = vmul.f32 0.11111111, %v2777_v22  ;;  %v720_v22 = vsub.f32 %v2461_v35, %v2681_v16  ;;  %v1326_v35 = vadd.f32 %v2793_v39, %v2571_v45  ;;  %v2848_v16 = vpop.permute.xlu2 %1079 }
 0x224   :  { %v1107_v9 = vmul.f32 0.11111111, %v1095_v37  ;;  %v1096_v42 = vadd.f32 %v1062_v19, %v1048_v54  ;;  %v1055_v37 = vadd.f32 %v1028_v29, %v2632_v5  ;;  %v1583_v54 = vpop.eup %1582  ;;  %v1391_v26 = vmul.f32 -10.0, %v1379_v15 }
 0x225   :  { %v1395_v57 = vmul.f32 -10.0, %v1383_v58 }
 0x226   :  { %v1119_v18 = vmul.f32 -10.0, %v1107_v9  ;;  %v1108_v49 = vmul.f32 0.11111111, %v1096_v42  ;;  %v1585_v9 = vpop.eup %1584  ;;  %v1103_v42 = vadd.f32 %v1076_v13, %v1055_v37  ;;  %v1058_v13 = vadd.f32 %v2810_v6, %v2671_v47 }
 0x227   :  { %v732_v37 = vand.u32 2147483647, %v720_v22 }
 0x228   :  { %v1131_v1 = vmul.f32 1.442695, %v1119_v18  ;;  %v1120_v3 = vmul.f32 -10.0, %v1108_v49  ;;  %v730_v18 = vand.u32 2147483647, %v718_v46  ;;  %v1423_v49 = vmul.f32 %v1583_v54, %v765_v34 }
 0x229   :  { %v1020_v50 = vpop.permute.xlu1 %1019  ;;  %v1018_v36 = vpop.permute.xlu0 %1017  ;;  %v1115_v8 = vmul.f32 0.11111111, %v1103_v42  ;;  %v1106_v47 = vadd.f32 %v2812_v2, %v1058_v13  ;;  %v749_v46 = vld [vmem:[#allocation2 + $0x40] sm:$0x1]  ;;  %v1393_v54 = vmul.f32 -10.0, %v1381_v24  ;;  %v721_v2 = vsub.f32 %v2561_v44, %v2787_v41 }
 0x22a   :  { %1586 = vpow2.f32 %v1131_v1  ;;  %v1133_v62 = vmul.f32 1.442695, %v1120_v3  ;;  %v1050_v19 = vadd.f32 %v1018_v36, %v2674_v60  ;;  %v1424_v3 = vmul.f32 %v1585_v9, %v766_v17 }
 0x22b   :  { %v1127_v34 = vmul.f32 -10.0, %v1115_v8  ;;  %v1415_v17 = vmul.f32 1.442695, %v1395_v57  ;;  %v694_v13 = vpop.permute.xlu2 %693  ;;  %v752_v57 = vld [vmem:[#allocation2 + $0x58] sm:$0x1] }
 0x22c   :  { %1588 = vpow2.f32 %v1133_v62  ;;  %v1098_v11 = vadd.f32 %v1066_v25, %v1050_v19  ;;  %v1051_v25 = vadd.f32 %v1020_v50, %v2716_v20  ;;  %v768_v62 = vand.u32 2147483647, %v756_v40  ;;  %v745_v19 = vld [vmem:[#allocation2 + $0x20] sm:$0xff] }
 0x22d   :  { %1590 = vpow2.f32 %v1405_v28  ;;  %v1407_v20 = vmul.f32 1.442695, %v1391_v26  ;;  %v757_v6 = vsub.f32 %v2561_v44, %v745_v19  ;;  %v1147_v26 = vmul.f32 1.442695, %v1127_v34 }
 0x22e   :  { %v1110_v60 = vmul.f32 0.11111111, %v1098_v11  ;;  %v723_v34 = vsub.f32 %v2764_v63, %v694_v13 }
 0x230   :  { %v1587_v21 = vpop.eup %1586  ;;  %v1122_v27 = vmul.f32 -10.0, %v1110_v60 }
 0x231   :  { %v1026_v43 = vpop.permute.xlu1 %1025  ;;  %v1068_v5 = vpop.permute.xlu0 %1067  ;;  %v1155_v29 = vmul.f32 %v1587_v21, %v729_v53 }
 0x232   :  { %v1589_v14 = vpop.eup %1588  ;;  %v1137_v38 = vmul.f32 1.442695, %v1122_v27  ;;  %v1099_v1 = vadd.f32 %v1068_v5, %v1051_v25  ;;  %v1118_v25 = vmul.f32 0.11111111, %v1106_v47  ;;  %v1054_v45 = vadd.f32 %v1026_v43, %v2721_v33 }
 0x233   :  { %v1435_v36 = vadd.f32 %v1423_v49, %v1155_v29  ;;  %v1156_v31 = vmul.f32 %v1589_v14, %v730_v18  ;;  %v1591_v15 = vpop.eup %1590  ;;  %v761_v27 = vsub.f32 %v2759_v52, %v749_v46  ;;  %v769_v5 = vand.u32 2147483647, %v757_v6 }
 0x234   :  { %1592 = vpow2.f32 %v1137_v38  ;;  %v1111_v50 = vmul.f32 0.11111111, %v1099_v1  ;;  %v1426_v40 = vmul.f32 %v1591_v15, %v768_v62  ;;  %v1411_v14 = vmul.f32 1.442695, %v1393_v54  ;;  %v747_v1 = vld [vmem:[#allocation2 + $0x30] sm:$0xff] }
 0x235   :  { %1459 = vrot.lane.b32.xlu2 %v1435_v36, %s1811_s25  ;;  %v1436_v28 = vadd.f32 %v1424_v3, %v1156_v31  ;;  %1594 = vpow2.f32 %v1407_v20  ;;  %v733_v38 = vand.u32 2147483647, %v721_v2  ;;  %v1102_v3 = vadd.f32 %v2821_v0, %v1054_v45 }
 0x236   :  { %v1123_v11 = vmul.f32 -10.0, %v1111_v50  ;;  %v773_v43 = vand.u32 2147483647, %v761_v27  ;;  %v759_v19 = vsub.f32 %v2764_v63, %v747_v1 }
 0x237   :  { %1461 = vrot.lane.b32.xlu0 %v1436_v28, %s1811_s25  ;;  %v1114_v15 = vmul.f32 0.11111111, %v1102_v3  ;;  %v700_v3 = vpop.permute.xlu2 %699 }
 0x238   :  { %v1139_v56 = vmul.f32 1.442695, %v1123_v11 }
 0x239   :  { %v1350_v60 = vpop.permute.xlu1 %1349  ;;  %v1024_v9 = vpop.permute.xlu0 %1023 }
 0x23a   :  { %v1593_v53 = vpop.eup %1592  ;;  %1596 = vpow2.f32 %v1139_v56  ;;  %v1374_v42 = vadd.f32 %v1350_v60, %v1326_v35  ;;  %v1053_v21 = vadd.f32 %v1024_v9, %v2691_v7  ;;  %v1130_v7 = vmul.f32 -10.0, %v1118_v25 }
 0x23b   :  { %v1158_v39 = vmul.f32 %v1593_v53, %v732_v37  ;;  %1598 = vpow2.f32 %v1415_v17  ;;  %v1595_v49 = vpop.eup %1594  ;;  %v1057_v35 = vadd.f32 %v2832_v48, %v2736_v12  ;;  %v771_v56 = vand.u32 2147483647, %v759_v19  ;;  %v751_v19 = vld [vmem:[#allocation2 + $0x50] sm:$0xff] }
 0x23c   :  { %v1386_v18 = vmul.f32 0.11111111, %v1374_v42  ;;  %v1101_v58 = vadd.f32 %v2814_v32, %v1053_v21  ;;  %1600 = vpow2.f32 %v1147_v26  ;;  %v1382_v32 = vmul.f32 0.11111111, %v2770_v59 }
 0x23d   :  { %v1438_v29 = vadd.f32 %v1426_v40, %v1158_v39  ;;  %v1427_v50 = vmul.f32 %v1595_v49, %v769_v5  ;;  %1602 = vpow2.f32 %v1411_v14  ;;  %v1153_v28 = vmul.f32 1.442695, %v1130_v7  ;;  %v748_v39 = vld [vmem:[#allocation2 + $0x38] sm:$0xff] }
 0x23e   :  { %v1398_v44 = vmul.f32 -10.0, %v1386_v18  ;;  %v1113_v41 = vmul.f32 0.11111111, %v1101_v58  ;;  %v1384_v59 = vmul.f32 0.11111111, %v2734_v23  ;;  %v1394_v46 = vmul.f32 -10.0, %v1382_v32 }
 0x23f   :  { %1465 = vrot.lane.b32.xlu2 %v1438_v29, %s1811_s25  ;;  %v1105_v63 = vadd.f32 %v2848_v16, %v1057_v35  ;;  %v1126_v17 = vmul.f32 -10.0, %v1114_v15  ;;  %v735_v23 = vand.u32 2147483647, %v723_v34  ;;  %v1385_v12 = vmul.f32 0.11111111, %v2756_v51 }
 0x240   :  { %v1597_v33 = vpop.eup %1596  ;;  %v1125_v8 = vmul.f32 -10.0, %v1113_v41  ;;  %v1421_v36 = vmul.f32 1.442695, %v1398_v44  ;;  %v1396_v9 = vmul.f32 -10.0, %v1384_v59  ;;  %v1413_v2 = vmul.f32 1.442695, %v1394_v46 }
 0x241   :  { %v1030_v31 = vpop.permute.xlu0 %1029  ;;  %v698_v62 = vpop.permute.xlu1 %697  ;;  %v1159_v20 = vmul.f32 %v1597_v33, %v733_v38  ;;  %v1117_v27 = vmul.f32 0.11111111, %v1105_v63  ;;  %v1145_v18 = vmul.f32 1.442695, %v1126_v17  ;;  %v1397_v51 = vmul.f32 -10.0, %v1385_v12  ;;  %v750_v38 = vld [vmem:[#allocation2 + $0x48] sm:$0xff] }
 0x242   :  { %v1143_v22 = vmul.f32 1.442695, %v1125_v8  ;;  %v725_v24 = vsub.f32 %v2759_v52, %v698_v62  ;;  %v1599_v0 = vpop.eup %1598  ;;  %v764_v52 = vsub.f32 %v2775_v61, %v752_v57  ;;  %v1056_v40 = vadd.f32 %v1030_v31, %v2762_v10 }
 0x243   :  { %v1439_v11 = vadd.f32 %v1427_v50, %v1159_v20  ;;  %v1601_v6 = vpop.eup %1600  ;;  %v1431_v54 = vmul.f32 %v1599_v0, %v773_v43  ;;  %v1417_v10 = vmul.f32 1.442695, %v1396_v9  ;;  %v760_v41 = vsub.f32 %v2789_v30, %v748_v39 }
 0x244   :  { %1604 = vpow2.f32 %v1143_v22  ;;  %v737_v47 = vand.u32 2147483647, %v725_v24  ;;  %v1603_v60 = vpop.eup %1602  ;;  %v776_v26 = vand.u32 2147483647, %v764_v52  ;;  %v1129_v33 = vmul.f32 -10.0, %v1117_v27 }
 0x245   :  { %1606 = vpow2.f32 %v1421_v36  ;;  %1467 = vrot.lane.b32.xlu0 %v1439_v11, %s1811_s25  ;;  %v1429_v5 = vmul.f32 %v1603_v60, %v771_v56  ;;  %v1419_v13 = vmul.f32 1.442695, %v1397_v51  ;;  %v762_v32 = vsub.f32 %v2783_v4, %v750_v38 }
 0x246   :  { %v1163_v37 = vmul.f32 %v1601_v6, %v737_v47  ;;  %1608 = vpow2.f32 %v1153_v28  ;;  %v726_v31 = vsub.f32 %v2783_v4, %v700_v3  ;;  %v772_v62 = vand.u32 2147483647, %v760_v41 }
 0x247   :  { %1610 = vpow2.f32 %v1413_v2  ;;  %v1151_v22 = vmul.f32 1.442695, %v1129_v33  ;;  %v774_v57 = vand.u32 2147483647, %v762_v32  ;;  %v763_v11 = vsub.f32 %v2795_v55, %v751_v19 }
 0x248   :  { %v1443_v53 = vadd.f32 %v1431_v54, %v1163_v37  ;;  %1612 = vpow2.f32 %v1145_v18  ;;  %v738_v28 = vand.u32 2147483647, %v726_v31 }
 0x249   :  { %v1078_v48 = vpop.permute.xlu0 %1077  ;;  %v704_v42 = vpop.permute.xlu1 %703  ;;  %1614 = vpow2.f32 %v1417_v10  ;;  %v775_v35 = vand.u32 2147483647, %v763_v11 }
 0x24a   :  { %v1605_v21 = vpop.eup %1604  ;;  %v1104_v25 = vadd.f32 %v1078_v48, %v1056_v40  ;;  %v728_v45 = vsub.f32 %v2775_v61, %v704_v42  ;;  %1475 = vrot.lane.b32.xlu1 %v1443_v53, %s1811_s25 }
 0x24b   :  { %v1607_v16 = vpop.eup %1606  ;;  %v1161_v58 = vmul.f32 %v1605_v21, %v735_v23 }
 0x24c   :  { %v1116_v29 = vmul.f32 0.11111111, %v1104_v25  ;;  %v740_v49 = vand.u32 2147483647, %v728_v45  ;;  %v1609_v14 = vpop.eup %1608  ;;  %v1434_v7 = vmul.f32 %v1607_v16, %v776_v26 }
 0x24d   :  { %v1441_v44 = vadd.f32 %v1429_v5, %v1161_v58  ;;  %v1611_v50 = vpop.eup %1610 }
 0x24e   :  { %v1128_v1 = vmul.f32 -10.0, %v1116_v29  ;;  %v1166_v61 = vmul.f32 %v1609_v14, %v740_v49  ;;  %v1613_v0 = vpop.eup %1612  ;;  %v1430_v59 = vmul.f32 %v1611_v50, %v772_v62 }
 0x24f   :  { %1471 = vrot.lane.b32.xlu2 %v1441_v44, %s1811_s25  ;;  %v1615_v15 = vpop.eup %1614 }
 0x250   :  { %v1149_v43 = vmul.f32 1.442695, %v1128_v1  ;;  %v1446_v8 = vadd.f32 %v1434_v7, %v1166_v61  ;;  %v1432_v46 = vmul.f32 %v1615_v15, %v774_v57 }
 0x251   :  { %v696_v36 = vpop.permute.xlu0 %695 }
 0x252   :  { %1616 = vpow2.f32 %v1149_v43  ;;  %v724_v20 = vsub.f32 %v2789_v30, %v696_v36  ;;  %1481 = vrot.lane.b32.xlu1 %v1446_v8, %s1811_s25 }
 0x253   :  { %1618 = vpow2.f32 %v1419_v13 }
 0x254   :  { %v736_v24 = vand.u32 2147483647, %v724_v20  ;;  %1620 = vpow2.f32 %v1151_v22 }
 0x256   :  { %v1162_v34 = vmul.f32 %v1613_v0, %v736_v24 }
 0x258   :  { %v1617_v4 = vpop.eup %1616  ;;  %v1442_v47 = vadd.f32 %v1430_v59, %v1162_v34 }
 0x259   :  { %v1164_v6 = vmul.f32 %v1617_v4, %v738_v28  ;;  %v702_v30 = vpop.permute.xlu0 %701  ;;  %v1619_v56 = vpop.eup %1618 }
 0x25a   :  { %v727_v52 = vsub.f32 %v2795_v55, %v702_v30  ;;  %1473 = vrot.lane.b32.xlu0 %v1442_v47, %s1811_s25  ;;  %v1621_v63 = vpop.eup %1620  ;;  %v1433_v23 = vmul.f32 %v1619_v56, %v775_v35 }
 0x25b   :  { %v1444_v37 = vadd.f32 %v1432_v46, %v1164_v6 }
 0x25c   :  { %v739_v54 = vand.u32 2147483647, %v727_v52 }
 0x25d   :  { %1477 = vrot.lane.b32.xlu2 %v1444_v37, %s1811_s25 }
 0x25e   :  { %v1165_v17 = vmul.f32 %v1621_v63, %v739_v54 }
 0x260   :  { %v1445_v60 = vadd.f32 %v1433_v23, %v1165_v17 }
 0x262   :  { %1479 = vrot.lane.b32.xlu0 %v1445_v60, %s1811_s25 }
 0x274   :  { %v1464_v2 = vpop.permute.xlu1 %1463 }
 0x275   :  { %v1500_v48 = vsel %vm1499_vm0, %v1464_v2, 0.0 }
 0x287   :  { %v1470_v16 = vpop.permute.xlu1 %1469 }
 0x288   :  { %v1506_v18 = vsel %vm1499_vm0, %v1470_v16, 0.0 }
 0x28f   :  { %v1460_v40 = vpop.permute.xlu2 %1459 }
 0x290   :  { %v1496_v55 = vsel %vm1495_vm15, %v1460_v40, 0.0 }
 0x299   :  { %v1466_v42 = vpop.permute.xlu2 %1465 }
 0x29a   :  { %v1502_v25 = vsel %vm1495_vm15, %v1466_v42, 0.0 }
 0x2a9   :  { %v1462_v9 = vpop.permute.xlu0 %1461  ;;  %v1472_v58 = vpop.permute.xlu2 %1471 }
 0x2aa   :  { %v1497_v53 = vsel %vm1495_vm15, %v1462_v9, 0.0  ;;  %v1508_v29 = vsel %vm1495_vm15, %v1472_v58, 0.0 }
 0x2ab   :  { %v1498_v12 = vadd.f32 %v1497_v53, %v1496_v55 }
 0x2ad   :  { %v1501_v21 = vadd.f32 %v1500_v48, %v1498_v12 }
 0x2af   :  { %v1503_v39 = vadd.f32 %v1502_v25, %v1501_v21 }
 0x2b7   :  { %v1468_v26 = vpop.permute.xlu0 %1467  ;;  %v1478_v38 = vpop.permute.xlu2 %1477 }
 0x2b8   :  { %v1504_v45 = vsel %vm1495_vm15, %v1468_v26, 0.0  ;;  %v1514_v61 = vsel %vm1495_vm15, %v1478_v38, 0.0 }
 0x2b9   :  { %v1505_v27 = vadd.f32 %v1504_v45, %v1503_v39 }
 0x2bb   :  { %v1507_v5 = vadd.f32 %v1506_v18, %v1505_v27 }
 0x2bc   :  { %v1476_v10 = vpop.permute.xlu1 %1475 }
 0x2bd   :  { %v1509_v14 = vadd.f32 %v1508_v29, %v1507_v5  ;;  %v1512_v41 = vsel %vm1499_vm0, %v1476_v10, 0.0 }
 0x2c4   :  { %v1482_v7 = vpop.permute.xlu1 %1481 }
 0x2c5   :  { %v1518_v13 = vsel %vm1499_vm0, %v1482_v7, 0.0 }
 0x2cc   :  { %v1474_v49 = vpop.permute.xlu0 %1473 }
 0x2cd   :  { %v1510_v51 = vsel %vm1495_vm15, %v1474_v49, 0.0 }
 0x2ce   :  { %v1511_v44 = vadd.f32 %v1510_v51, %v1509_v14 }
 0x2d0   :  { %v1513_v1 = vadd.f32 %v1512_v41, %v1511_v44 }
 0x2d2   :  { %v1515_v33 = vadd.f32 %v1514_v61, %v1513_v1 }
 0x2d4   :  { %v1480_v3 = vpop.permute.xlu0 %1479 }
 0x2d5   :  { %v1516_v43 = vsel %vm1495_vm15, %v1480_v3, 0.0 }
 0x2d6   :  { %v1517_v8 = vadd.f32 %v1516_v43, %v1515_v33 }
 0x2d8   :  { %v1519_v32 = vadd.f32 %v1518_v13, %v1517_v8 }
 0x2da   :  { %1520 = vadd.xlane.f32.xlu2 %v1519_v32 }
 0x34d   :  { %v1521_v36 = vpop.xlane.xlu2 %1520 }
 0x34e   :  { %v1522_v31 = vrot.slane %v1521_v36, 4 }
 0x350   :  { %v1523_v62 = vadd.f32 %v1522_v31, %v1521_v36 }
 0x352   :  { %v1524_v20 = vrot.slane %v1523_v62, 2 }
 0x354   :  { %v1525_v50 = vadd.f32 %v1524_v20, %v1523_v62 }
 0x356   :  { %v1526_v19 = vrot.slane %v1525_v50, 1 }
 0x358   :  { %v1527_v22 = vadd.f32 %v1526_v19, %v1525_v50 }
 0x35a   :  { %1558 = vpush %v1527_v22 }
 0x38b   :  { %s1559_s29 = spop %1558 }
 0x38c   :  { %s1530_s8 = smul.f32 0.00017301038, %s1559_s29 }
 0x38e   :  { %s1531_s3 = sadd.f32 %s1530_s8, %s1529_s28 }
 0x390   :  { %v1532_v24 = vstv %s1531_s3 }
 0x391   :  { %1535 = vst.msk [vmem:[#allocation15] sm:$0x1] %vm1534_vm1, %v1532_v24 }
 0x392   :  { %1546 = dma.vmem_to_hbm [thread:$0]  %s1542_s7, 16, %s1544_s1, [#allocation6]  }
 0x393   :  { %1798 = dma.done.wait [#allocation6], 16  }
 0x394   :  { %1799 = vsyncadd [#allocation6], 4294967280 }
 0x395   :  { %1551 = vsyncpa [#allocation5], 1 }
 0x396   :  { %1552 = vsyncpa [#allocation8], 1 }
 0x397   :  { %1553 = vsyncpa [#allocation11], 1 }
 0x398   :  { %1554 = vsyncpa [#allocation14], 1 }
 0x399   :  { %1555 = vsyncpa [#allocation6], 1 }

</bundles_post_ra>
